<compile_context>
chip_gen: v6e
topology: v6e:2x2x1
jax: 0.10.0
libtpu: 0.0.40
codegen_flags: <defaults>
</compile_context>

<pallas_src>
import functools

import jax
import jax.numpy as jnp
from jax.experimental import pallas as pl
from jax.experimental.pallas import tpu as pltpu

LN_EPS = 1e-5  # torch.nn.LayerNorm default


def _erf(x):
    # Abramowitz & Stegun 7.1.26 (|err| < 1.5e-7) — f32-accurate stand-in for exact erf,
    # built from exp only so it lowers cleanly in Mosaic.
    a1, a2, a3, a4, a5 = (0.254829592, -0.284496736, 1.421413741,
                          -1.453152027, 1.061405429)
    p = 0.3275911
    s = jnp.where(x < 0.0, -1.0, 1.0)
    ax = jnp.abs(x)
    t = 1.0 / (1.0 + p * ax)
    poly = ((((a5 * t + a4) * t + a3) * t + a2) * t + a1) * t
    return s * (1.0 - poly * jnp.exp(-ax * ax))


def _gelu_exact(x):
    # torch.nn.GELU() default is the exact (erf) GELU.
    return 0.5 * x * (1.0 + _erf(x * 0.7071067811865476))


def _layernorm(x, w, b):
    mu = jnp.mean(x, axis=-1, keepdims=True)
    var = jnp.mean(jnp.square(x - mu), axis=-1, keepdims=True)
    return (x - mu) * jax.lax.rsqrt(var + LN_EPS) * w + b


# --------------------------------------------------------------------------- #
# Pallas kernel: Bt batch elements per grid step, full token/channel block.
# --------------------------------------------------------------------------- #
def class_attention_block_kernel(
        x_ref, ln1_w, ln1_b, wq, wkv, wp, bp, g1,
        ln2_w, ln2_b, w1, b1, w2, b2, g2, sel_dh, sel_hd,
        o_ref, *, num_heads):
    Bt, N, D = x_ref.shape
    H = num_heads
    hd = D // H
    scale = float(hd) ** -0.5
    f32 = jnp.float32
    bf16 = jnp.bfloat16

    x = x_ref[...].astype(f32)                               # (Bt, N, D)

    # ---- norm1 (f32) ---------------------------------------------------------
    xn = _layernorm(x, ln1_w[...], ln1_b[...])               # (Bt, N, D)

    # ---- non-CLS rows of the final output ------------------------------------
    # out[:, 1:] = 2 * (x + gamma1 * norm1(x))[:, 1:]; compute it for every row
    # (row 0 is filler) and store the whole lane-dense block once.  The CLS row
    # is overwritten below after the attention / MLP path.
    xa_all = x + g1[...] * xn                                # (Bt, N, D)
    o_ref[...] = (xa_all + xa_all).astype(o_ref.dtype)

    # ---- class attention (only the CLS token queries) ------------------------
    xn_flat = xn.reshape(Bt * N, D)
    kv = jnp.dot(xn_flat.astype(bf16), wkv[...],
                 preferred_element_type=f32)                 # (Bt*N, 2D)
    k = kv[:, :D].reshape(Bt, N, D)
    v = kv[:, D:].reshape(Bt, N, D)

    cls_xn = xn[:, 0, :]                                     # (Bt, D)
    q = jnp.dot(cls_xn.astype(bf16), wq[...],
                preferred_element_type=f32)                  # (Bt, D)

    # Per-head logits via a 0/1 head-selector matmul (MXU) instead of a Python
    # head loop of tiny XLU reductions:
    #   logits[b, n, h] = sum_{d in head h} q[b, d] * k[b, n, d]
    qk = (q[:, None, :] * k).reshape(Bt * N, D)              # (Bt*N, D)
    logits = jnp.dot(qk, sel_dh[...],
                     preferred_element_type=f32)             # (Bt*N, H)
    logits = (logits * scale).reshape(Bt, N, H)

    m = jnp.max(logits, axis=1, keepdims=True)               # (Bt, 1, H)
    e = jnp.exp(logits - m)                                  # (Bt, N, H)
    denom = jnp.sum(e, axis=1, keepdims=True)                # (Bt, 1, H)
    attn = e * pl.reciprocal(denom, approx=True)             # (Bt, N, H)

    # Broadcast attn back over head_dim with the transposed selector, weight v,
    # reduce over tokens, then ONE output projection.
    attn_b = jnp.dot(attn.reshape(Bt * N, H), sel_hd[...],
                     preferred_element_type=f32).reshape(Bt, N, D)
    head_out = jnp.sum(attn_b * v, axis=1)                   # (Bt, D)

    x1 = jnp.dot(head_out.astype(bf16), wp[...],
                 preferred_element_type=f32) + bp[...]       # (Bt, D)

    # ---- CLS row: residual 1, norm2, MLP (gamma2 on MLP only), residual 2 ----
    xa_cls = x[:, 0, :] + g1[...] * x1                       # (Bt, D)
    cls_n = _layernorm(xa_cls, ln2_w[...], ln2_b[...])       # (Bt, D)

    h1 = _gelu_exact(jnp.dot(cls_n.astype(bf16), w1[...],
                             preferred_element_type=f32) + b1[...])   # (Bt, Dh)
    cls2 = g2[...] * (jnp.dot(h1.astype(bf16), w2[...],
                              preferred_element_type=f32) + b2[...])  # (Bt, D)

    o_ref[:, 0:1, :] = (cls_n + cls2)[:, None, :].astype(o_ref.dtype)


# --------------------------------------------------------------------------- #
# Wrapper
# --------------------------------------------------------------------------- #
def class_attention_block(x, params, *, num_heads, batch_tile=None):
    B, N, D = x.shape
    assert D % num_heads == 0
    hd = D // num_heads
    if batch_tile is None:
        batch_tile = next(bt for bt in (8, 4, 2, 1) if B % bt == 0)
    assert B % batch_tile == 0
    grid = (B // batch_tile,)

    f32 = jnp.float32
    bf16 = jnp.bfloat16

    # Fused k/v weight; big matrices in bf16 (f32 accumulation in-kernel); small
    # vectors stay f32 so the elementwise / residual math is full precision.
    wkv = jnp.concatenate([params["wk"], params["wv"]], axis=1).astype(bf16)
    # 0/1 head-selector matrices (trace-time constants).
    sel_dh = jnp.repeat(jnp.eye(num_heads, dtype=f32), hd, axis=0)   # (D, H)
    sel_hd = sel_dh.T                                                # (H, D)

    args = [
        params["ln1_w"].astype(f32), params["ln1_b"].astype(f32),
        params["wq"].astype(bf16), wkv, params["wp"].astype(bf16),
        params["bp"].astype(f32), params["g1"].astype(f32),
        params["ln2_w"].astype(f32), params["ln2_b"].astype(f32),
        params["w1"].astype(bf16), params["b1"].astype(f32),
        params["w2"].astype(bf16), params["b2"].astype(f32),
        params["g2"].astype(f32),
        sel_dh, sel_hd,
    ]

    def full_spec(a):
        # Whole-array block, same block for every grid step (resident weights).
        return pl.BlockSpec(a.shape, lambda b, nd=a.ndim: (0,) * nd)

    kernel = functools.partial(class_attention_block_kernel, num_heads=num_heads)
    return pl.pallas_call(
        kernel,
        out_shape=jax.ShapeDtypeStruct((B, N, D), x.dtype),
        grid_spec=pltpu.PrefetchScalarGridSpec(
            num_scalar_prefetch=0,
            grid=grid,
            in_specs=[pl.BlockSpec((batch_tile, N, D), lambda b: (b, 0, 0))]
                     + [full_spec(a) for a in args],
            out_specs=pl.BlockSpec((batch_tile, N, D), lambda b: (b, 0, 0)),
        ),
        compiler_params=pltpu.CompilerParams(
            dimension_semantics=("parallel",),
            vmem_limit_bytes=32 * 1024 * 1024),
    )(x, *args)


# --------------------------------------------------------------------------- #
# Pure-JAX reference (mirrors the PyTorch forward) for a correctness check.
# --------------------------------------------------------------------------- #
def reference(x, p, *, num_heads):
    B, N, D = x.shape
    hd = D // num_heads

    def ln(y, w, b):
        mu = y.mean(-1, keepdims=True)
        var = ((y - mu) ** 2).mean(-1, keepdims=True)
        return (y - mu) / jnp.sqrt(var + LN_EPS) * w + b

    xn = ln(x, p["ln1_w"], p["ln1_b"])
    q = xn[:, 0:1] @ p["wq"]
    k = xn @ p["wk"]
    v = xn @ p["wv"]
    qh = q.reshape(B, 1, num_heads, hd).transpose(0, 2, 1, 3)
    kh = k.reshape(B, N, num_heads, hd).transpose(0, 2, 1, 3)
    vh = v.reshape(B, N, num_heads, hd).transpose(0, 2, 1, 3)
    attn = jax.nn.softmax((qh * hd ** -0.5) @ kh.transpose(0, 1, 3, 2), axis=-1)
    x1 = (attn @ vh).transpose(0, 2, 1, 3).reshape(B, 1, D) @ p["wp"] + p["bp"]
    x_attn = jnp.concatenate([x1, xn[:, 1:]], axis=1)
    xa = x + p["g1"] * x_attn
    cls_n = ln(xa[:, 0:1], p["ln2_w"], p["ln2_b"])
    x_res = jnp.concatenate([cls_n, xa[:, 1:]], axis=1)
    h1 = jax.nn.gelu(cls_n @ p["w1"] + p["b1"], approximate=False)
    cls2 = p["g2"] * (h1 @ p["w2"] + p["b2"])
    # gamma2 applies only to mlp(cls); non-CLS rows are doubled (as in PyTorch).
    return x_res + jnp.concatenate([cls2, x_res[:, 1:]], axis=1)


if __name__ == "__main__":
    B, N, D = 8, 16, 128
    num_heads = 4
    hidden = int(D * 4.0)

    key = jax.random.PRNGKey(0)
    ks = jax.random.split(key, 18)

    def nrm(k, shape, s=0.05):
        return (s * jax.random.normal(k, shape)).astype(jnp.float32)

    params = {
        "ln1_w": (1.0 + nrm(ks[0], (1, D), 0.1)).astype(jnp.float32),
        "ln1_b": nrm(ks[1], (1, D), 0.1),
        "wq": nrm(ks[2], (D, D)),
        "wk": nrm(ks[3], (D, D)),
        "wv": nrm(ks[4], (D, D)),
        "wp": nrm(ks[5], (D, D)),
        "bp": nrm(ks[6], (1, D)),
        "g1": (1.0 + nrm(ks[14], (1, D), 0.1)).astype(jnp.float32),   # trained-like gamma1
        "ln2_w": (1.0 + nrm(ks[7], (1, D), 0.1)).astype(jnp.float32),
        "ln2_b": nrm(ks[8], (1, D), 0.1),
        "w1": nrm(ks[9], (D, hidden)),
        "b1": nrm(ks[10], (1, hidden)),
        "w2": nrm(ks[11], (hidden, D)),
        "b2": nrm(ks[12], (1, D)),
        "g2": (1.0 + nrm(ks[15], (1, D), 0.1)).astype(jnp.float32),   # trained-like gamma2
    }

    x = jax.random.normal(ks[13], (B, N, D), jnp.float32)

    out = class_attention_block(x, params, num_heads=num_heads, batch_tile=4)
    out = jax.block_until_ready(out)

    ref = reference(x, params, num_heads=num_heads)
    assert out.shape == (B, N, D)
    # bf16 matmul weights + approx reciprocal -> relaxed (but still tight) tolerance.
    err = float(jnp.max(jnp.abs(out - ref)))
    assert jnp.allclose(out, ref, atol=2e-2, rtol=2e-2), err
    print("KERNEL_OK")
</pallas_src>

<mosaic_0001>
module attributes {stable_mosaic.version = 11 : i64} {
  func.func @class_attention_block_kernel(%arg0: i32, %arg1: memref<4x16x128xf32, #tpu.memory_space<vmem>>, %arg2: memref<1x128xf32, #tpu.memory_space<vmem>>, %arg3: memref<1x128xf32, #tpu.memory_space<vmem>>, %arg4: memref<128x128xbf16, #tpu.memory_space<vmem>>, %arg5: memref<128x256xbf16, #tpu.memory_space<vmem>>, %arg6: memref<128x128xbf16, #tpu.memory_space<vmem>>, %arg7: memref<1x128xf32, #tpu.memory_space<vmem>>, %arg8: memref<1x128xf32, #tpu.memory_space<vmem>>, %arg9: memref<1x128xf32, #tpu.memory_space<vmem>>, %arg10: memref<1x128xf32, #tpu.memory_space<vmem>>, %arg11: memref<128x512xbf16, #tpu.memory_space<vmem>>, %arg12: memref<1x512xf32, #tpu.memory_space<vmem>>, %arg13: memref<512x128xbf16, #tpu.memory_space<vmem>>, %arg14: memref<1x128xf32, #tpu.memory_space<vmem>>, %arg15: memref<1x128xf32, #tpu.memory_space<vmem>>, %arg16: memref<128x4xf32, #tpu.memory_space<vmem>>, %arg17: memref<4x128xf32, #tpu.memory_space<vmem>>, %arg18: memref<4x16x128xf32, #tpu.memory_space<vmem>>) attributes {dimension_semantics = [#tpu.dimension_semantics<parallel>], iteration_bounds = array<i64: 2>, scalar_prefetch = 0 : i64, scratch_operands = 0 : i64, tpu.core_type = #tpu.core_type<tc>, window_params = [{transform_indices = @transform_0, window_bounds = array<i64: 4, 16, 128>}, {pipeline_mode = #tpu.pipeline_mode<synchronous>, transform_indices = @transform_1, window_bounds = array<i64: 1, 128>}, {pipeline_mode = #tpu.pipeline_mode<synchronous>, transform_indices = @transform_2, window_bounds = array<i64: 1, 128>}, {pipeline_mode = #tpu.pipeline_mode<synchronous>, transform_indices = @transform_3, window_bounds = array<i64: 128, 128>}, {pipeline_mode = #tpu.pipeline_mode<synchronous>, transform_indices = @transform_4, window_bounds = array<i64: 128, 256>}, {pipeline_mode = #tpu.pipeline_mode<synchronous>, transform_indices = @transform_5, window_bounds = array<i64: 128, 128>}, {pipeline_mode = #tpu.pipeline_mode<synchronous>, transform_indices = @transform_6, window_bounds = array<i64: 1, 128>}, {pipeline_mode = #tpu.pipeline_mode<synchronous>, transform_indices = @transform_7, window_bounds = array<i64: 1, 128>}, {pipeline_mode = #tpu.pipeline_mode<synchronous>, transform_indices = @transform_8, window_bounds = array<i64: 1, 128>}, {pipeline_mode = #tpu.pipeline_mode<synchronous>, transform_indices = @transform_9, window_bounds = array<i64: 1, 128>}, {pipeline_mode = #tpu.pipeline_mode<synchronous>, transform_indices = @transform_10, window_bounds = array<i64: 128, 512>}, {pipeline_mode = #tpu.pipeline_mode<synchronous>, transform_indices = @transform_11, window_bounds = array<i64: 1, 512>}, {pipeline_mode = #tpu.pipeline_mode<synchronous>, transform_indices = @transform_12, window_bounds = array<i64: 512, 128>}, {pipeline_mode = #tpu.pipeline_mode<synchronous>, transform_indices = @transform_13, window_bounds = array<i64: 1, 128>}, {pipeline_mode = #tpu.pipeline_mode<synchronous>, transform_indices = @transform_14, window_bounds = array<i64: 1, 128>}, {pipeline_mode = #tpu.pipeline_mode<synchronous>, transform_indices = @transform_15, window_bounds = array<i64: 128, 4>}, {pipeline_mode = #tpu.pipeline_mode<synchronous>, transform_indices = @transform_16, window_bounds = array<i64: 4, 128>}, {transform_indices = @transform_17, window_bounds = array<i64: 4, 16, 128>}]} {
    %c0 = arith.constant 0 : index
    %c0_0 = arith.constant 0 : index
    %c0_1 = arith.constant 0 : index
    %0 = vector.load %arg1[%c0, %c0_0, %c0_1] : memref<4x16x128xf32, #tpu.memory_space<vmem>>, vector<4x16x128xf32>
    %c0_2 = arith.constant 0 : index
    %c0_3 = arith.constant 0 : index
    %1 = vector.load %arg2[%c0_2, %c0_3] : memref<1x128xf32, #tpu.memory_space<vmem>>, vector<1x128xf32>
    %c0_4 = arith.constant 0 : index
    %c0_5 = arith.constant 0 : index
    %2 = vector.load %arg3[%c0_4, %c0_5] : memref<1x128xf32, #tpu.memory_space<vmem>>, vector<1x128xf32>
    %cst = arith.constant dense<0.000000e+00> : vector<4x16xf32>
    %3 = vector.multi_reduction <add>, %0, %cst [2] : vector<4x16x128xf32> to vector<4x16xf32>
    %4 = vector.shape_cast %3 : vector<4x16xf32> to vector<4x16x1xf32>
    %cst_6 = arith.constant 1.280000e+02 : f32
    %5 = vector.broadcast %cst_6 : f32 to vector<4x16x1xf32>
    %6 = arith.divf %4, %5 : vector<4x16x1xf32>
    %7 = vector.broadcast %6 : vector<4x16x1xf32> to vector<4x16x128xf32>
    %8 = arith.subf %0, %7 : vector<4x16x128xf32>
    %9 = arith.mulf %8, %8 : vector<4x16x128xf32>
    %cst_7 = arith.constant dense<0.000000e+00> : vector<4x16xf32>
    %10 = vector.multi_reduction <add>, %9, %cst_7 [2] : vector<4x16x128xf32> to vector<4x16xf32>
    %11 = vector.shape_cast %10 : vector<4x16xf32> to vector<4x16x1xf32>
    %cst_8 = arith.constant 1.280000e+02 : f32
    %12 = vector.broadcast %cst_8 : f32 to vector<4x16x1xf32>
    %13 = arith.divf %11, %12 : vector<4x16x1xf32>
    %14 = vector.broadcast %6 : vector<4x16x1xf32> to vector<4x16x128xf32>
    %15 = arith.subf %0, %14 : vector<4x16x128xf32>
    %cst_9 = arith.constant 9.99999974E-6 : f32
    %16 = vector.broadcast %cst_9 : f32 to vector<4x16x1xf32>
    %17 = arith.addf %13, %16 : vector<4x16x1xf32>
    %18 = math.rsqrt %17 : vector<4x16x1xf32>
    %19 = vector.broadcast %18 : vector<4x16x1xf32> to vector<4x16x128xf32>
    %20 = arith.mulf %15, %19 : vector<4x16x128xf32>
    %21 = vector.shape_cast %1 : vector<1x128xf32> to vector<1x1x128xf32>
    %22 = vector.broadcast %21 : vector<1x1x128xf32> to vector<4x16x128xf32>
    %23 = arith.mulf %20, %22 : vector<4x16x128xf32>
    %24 = vector.shape_cast %2 : vector<1x128xf32> to vector<1x1x128xf32>
    %25 = vector.broadcast %24 : vector<1x1x128xf32> to vector<4x16x128xf32>
    %26 = arith.addf %23, %25 : vector<4x16x128xf32>
    %c0_10 = arith.constant 0 : index
    %c0_11 = arith.constant 0 : index
    %27 = vector.load %arg8[%c0_10, %c0_11] : memref<1x128xf32, #tpu.memory_space<vmem>>, vector<1x128xf32>
    %28 = vector.shape_cast %27 : vector<1x128xf32> to vector<1x1x128xf32>
    %29 = vector.broadcast %28 : vector<1x1x128xf32> to vector<4x16x128xf32>
    %30 = arith.mulf %29, %26 : vector<4x16x128xf32>
    %31 = arith.addf %0, %30 : vector<4x16x128xf32>
    %32 = arith.addf %31, %31 : vector<4x16x128xf32>
    %c0_12 = arith.constant 0 : index
    %c0_13 = arith.constant 0 : index
    %c0_14 = arith.constant 0 : index
    %33 = vector.load %arg18[%c0_12, %c0_13, %c0_14] : memref<4x16x128xf32, #tpu.memory_space<vmem>>, vector<4x16x128xf32>
    tpu.vector_store %arg18[%c0_12, %c0_13, %c0_14], %32 {strides = array<i32>} : memref<4x16x128xf32, #tpu.memory_space<vmem>>, vector<4x16x128xf32>,
    %34 = vector.shape_cast %26 : vector<4x16x128xf32> to vector<64x128xf32>
    %35 = arith.truncf %34 : vector<64x128xf32> to vector<64x128xbf16>
    %c0_15 = arith.constant 0 : index
    %c0_16 = arith.constant 0 : index
    %36 = vector.load %arg5[%c0_15, %c0_16] : memref<128x256xbf16, #tpu.memory_space<vmem>>, vector<128x256xbf16>
    %cst_17 = arith.constant dense<0.000000e+00> : vector<64x256xf32>
    %37 = tpu.matmul %35, %36, %cst_17 {dimension_numbers = #tpu.dot_dimension_numbers<[1], [0], [0], [1], [0, 0, 1, 1], [], []>} : vector<64x128xbf16>, vector<128x256xbf16>, vector<64x256xf32> -> vector<64x256xf32>
    %38 = vector.extract_strided_slice %37 {offsets = [0, 0], sizes = [64, 128], strides = [1, 1]} : vector<64x256xf32> to vector<64x128xf32>
    %39 = vector.shape_cast %38 : vector<64x128xf32> to vector<4x16x128xf32>
    %40 = vector.extract_strided_slice %37 {offsets = [0, 128], sizes = [64, 128], strides = [1, 1]} : vector<64x256xf32> to vector<64x128xf32>
    %41 = vector.shape_cast %40 : vector<64x128xf32> to vector<4x16x128xf32>
    %42 = vector.extract_strided_slice %26 {offsets = [0, 0, 0], sizes = [4, 1, 128], strides = [1, 1, 1]} : vector<4x16x128xf32> to vector<4x1x128xf32>
    %43 = vector.shape_cast %42 : vector<4x1x128xf32> to vector<4x128xf32>
    %44 = arith.truncf %43 : vector<4x128xf32> to vector<4x128xbf16>
    %c0_18 = arith.constant 0 : index
    %c0_19 = arith.constant 0 : index
    %45 = vector.load %arg4[%c0_18, %c0_19] : memref<128x128xbf16, #tpu.memory_space<vmem>>, vector<128x128xbf16>
    %cst_20 = arith.constant dense<0.000000e+00> : vector<4x128xf32>
    %46 = tpu.matmul %44, %45, %cst_20 {dimension_numbers = #tpu.dot_dimension_numbers<[1], [0], [0], [1], [0, 0, 1, 1], [], []>} : vector<4x128xbf16>, vector<128x128xbf16>, vector<4x128xf32> -> vector<4x128xf32>
    %47 = vector.shape_cast %46 : vector<4x128xf32> to vector<4x1x128xf32>
    %48 = vector.broadcast %47 : vector<4x1x128xf32> to vector<4x16x128xf32>
    %49 = arith.mulf %48, %39 : vector<4x16x128xf32>
    %50 = vector.shape_cast %49 : vector<4x16x128xf32> to vector<64x128xf32>
    %c0_21 = arith.constant 0 : index
    %c0_22 = arith.constant 0 : index
    %51 = vector.load %arg16[%c0_21, %c0_22] : memref<128x4xf32, #tpu.memory_space<vmem>>, vector<128x4xf32>
    %cst_23 = arith.constant dense<0.000000e+00> : vector<64x4xf32>
    %52 = tpu.matmul %50, %51, %cst_23 {dimension_numbers = #tpu.dot_dimension_numbers<[1], [0], [0], [1], [0, 0, 1, 1], [], []>} : vector<64x128xf32>, vector<128x4xf32>, vector<64x4xf32> -> vector<64x4xf32>
    %cst_24 = arith.constant 0.176776692 : f32
    %53 = vector.broadcast %cst_24 : f32 to vector<64x4xf32>
    %54 = arith.mulf %52, %53 : vector<64x4xf32>
    %55 = vector.shape_cast %54 : vector<64x4xf32> to vector<4x16x4xf32>
    %cst_25 = arith.constant dense<0xFF800000> : vector<4x4xf32>
    %56 = vector.multi_reduction <maximumf>, %55, %cst_25 [1] : vector<4x16x4xf32> to vector<4x4xf32>
    %57 = vector.shape_cast %56 : vector<4x4xf32> to vector<4x1x4xf32>
    %58 = vector.broadcast %57 : vector<4x1x4xf32> to vector<4x16x4xf32>
    %59 = arith.subf %55, %58 : vector<4x16x4xf32>
    %60 = math.exp %59 : vector<4x16x4xf32>
    %cst_26 = arith.constant dense<0.000000e+00> : vector<4x4xf32>
    %61 = vector.multi_reduction <add>, %60, %cst_26 [1] : vector<4x16x4xf32> to vector<4x4xf32>
    %62 = vector.shape_cast %61 : vector<4x4xf32> to vector<4x1x4xf32>
    %63 = tpu.reciprocal %62 {approx = true} : vector<4x1x4xf32> -> vector<4x1x4xf32>
    %64 = vector.broadcast %63 : vector<4x1x4xf32> to vector<4x16x4xf32>
    %65 = arith.mulf %60, %64 : vector<4x16x4xf32>
    %66 = vector.shape_cast %65 : vector<4x16x4xf32> to vector<64x4xf32>
    %c0_27 = arith.constant 0 : index
    %c0_28 = arith.constant 0 : index
    %67 = vector.load %arg17[%c0_27, %c0_28] : memref<4x128xf32, #tpu.memory_space<vmem>>, vector<4x128xf32>
    %cst_29 = arith.constant dense<0.000000e+00> : vector<64x128xf32>
    %68 = tpu.matmul %66, %67, %cst_29 {dimension_numbers = #tpu.dot_dimension_numbers<[1], [0], [0], [1], [0, 0, 1, 1], [], []>} : vector<64x4xf32>, vector<4x128xf32>, vector<64x128xf32> -> vector<64x128xf32>
    %69 = vector.shape_cast %68 : vector<64x128xf32> to vector<4x16x128xf32>
    %70 = arith.mulf %69, %41 : vector<4x16x128xf32>
    %cst_30 = arith.constant dense<0.000000e+00> : vector<4x128xf32>
    %71 = vector.multi_reduction <add>, %70, %cst_30 [1] : vector<4x16x128xf32> to vector<4x128xf32>
    %72 = arith.truncf %71 : vector<4x128xf32> to vector<4x128xbf16>
    %c0_31 = arith.constant 0 : index
    %c0_32 = arith.constant 0 : index
    %73 = vector.load %arg6[%c0_31, %c0_32] : memref<128x128xbf16, #tpu.memory_space<vmem>>, vector<128x128xbf16>
    %cst_33 = arith.constant dense<0.000000e+00> : vector<4x128xf32>
    %74 = tpu.matmul %72, %73, %cst_33 {dimension_numbers = #tpu.dot_dimension_numbers<[1], [0], [0], [1], [0, 0, 1, 1], [], []>} : vector<4x128xbf16>, vector<128x128xbf16>, vector<4x128xf32> -> vector<4x128xf32>
    %c0_34 = arith.constant 0 : index
    %c0_35 = arith.constant 0 : index
    %75 = vector.load %arg7[%c0_34, %c0_35] : memref<1x128xf32, #tpu.memory_space<vmem>>, vector<1x128xf32>
    %76 = vector.broadcast %75 : vector<1x128xf32> to vector<4x128xf32>
    %77 = arith.addf %74, %76 : vector<4x128xf32>
    %78 = vector.extract_strided_slice %0 {offsets = [0, 0, 0], sizes = [4, 1, 128], strides = [1, 1, 1]} : vector<4x16x128xf32> to vector<4x1x128xf32>
    %79 = vector.shape_cast %78 : vector<4x1x128xf32> to vector<4x128xf32>
    %c0_36 = arith.constant 0 : index
    %c0_37 = arith.constant 0 : index
    %80 = vector.load %arg8[%c0_36, %c0_37] : memref<1x128xf32, #tpu.memory_space<vmem>>, vector<1x128xf32>
    %81 = vector.broadcast %80 : vector<1x128xf32> to vector<4x128xf32>
    %82 = arith.mulf %81, %77 : vector<4x128xf32>
    %83 = arith.addf %79, %82 : vector<4x128xf32>
    %c0_38 = arith.constant 0 : index
    %c0_39 = arith.constant 0 : index
    %84 = vector.load %arg9[%c0_38, %c0_39] : memref<1x128xf32, #tpu.memory_space<vmem>>, vector<1x128xf32>
    %c0_40 = arith.constant 0 : index
    %c0_41 = arith.constant 0 : index
    %85 = vector.load %arg10[%c0_40, %c0_41] : memref<1x128xf32, #tpu.memory_space<vmem>>, vector<1x128xf32>
    %cst_42 = arith.constant dense<0.000000e+00> : vector<4xf32>
    %86 = vector.multi_reduction <add>, %83, %cst_42 [1] : vector<4x128xf32> to vector<4xf32>
    %87 = vector.shape_cast %86 : vector<4xf32> to vector<4x1xf32>
    %cst_43 = arith.constant 1.280000e+02 : f32
    %88 = vector.broadcast %cst_43 : f32 to vector<4x1xf32>
    %89 = arith.divf %87, %88 : vector<4x1xf32>
    %90 = vector.broadcast %89 : vector<4x1xf32> to vector<4x128xf32>
    %91 = arith.subf %83, %90 : vector<4x128xf32>
    %92 = arith.mulf %91, %91 : vector<4x128xf32>
    %cst_44 = arith.constant dense<0.000000e+00> : vector<4xf32>
    %93 = vector.multi_reduction <add>, %92, %cst_44 [1] : vector<4x128xf32> to vector<4xf32>
    %94 = vector.shape_cast %93 : vector<4xf32> to vector<4x1xf32>
    %cst_45 = arith.constant 1.280000e+02 : f32
    %95 = vector.broadcast %cst_45 : f32 to vector<4x1xf32>
    %96 = arith.divf %94, %95 : vector<4x1xf32>
    %97 = vector.broadcast %89 : vector<4x1xf32> to vector<4x128xf32>
    %98 = arith.subf %83, %97 : vector<4x128xf32>
    %cst_46 = arith.constant 9.99999974E-6 : f32
    %99 = vector.broadcast %cst_46 : f32 to vector<4x1xf32>
    %100 = arith.addf %96, %99 : vector<4x1xf32>
    %101 = math.rsqrt %100 : vector<4x1xf32>
    %102 = vector.broadcast %101 : vector<4x1xf32> to vector<4x128xf32>
    %103 = arith.mulf %98, %102 : vector<4x128xf32>
    %104 = vector.broadcast %84 : vector<1x128xf32> to vector<4x128xf32>
    %105 = arith.mulf %103, %104 : vector<4x128xf32>
    %106 = vector.broadcast %85 : vector<1x128xf32> to vector<4x128xf32>
    %107 = arith.addf %105, %106 : vector<4x128xf32>
    %108 = arith.truncf %107 : vector<4x128xf32> to vector<4x128xbf16>
    %c0_47 = arith.constant 0 : index
    %c0_48 = arith.constant 0 : index
    %109 = vector.load %arg11[%c0_47, %c0_48] : memref<128x512xbf16, #tpu.memory_space<vmem>>, vector<128x512xbf16>
    %cst_49 = arith.constant dense<0.000000e+00> : vector<4x512xf32>
    %110 = tpu.matmul %108, %109, %cst_49 {dimension_numbers = #tpu.dot_dimension_numbers<[1], [0], [0], [1], [0, 0, 1, 1], [], []>} : vector<4x128xbf16>, vector<128x512xbf16>, vector<4x512xf32> -> vector<4x512xf32>
    %c0_50 = arith.constant 0 : index
    %c0_51 = arith.constant 0 : index
    %111 = vector.load %arg12[%c0_50, %c0_51] : memref<1x512xf32, #tpu.memory_space<vmem>>, vector<1x512xf32>
    %112 = vector.broadcast %111 : vector<1x512xf32> to vector<4x512xf32>
    %113 = arith.addf %110, %112 : vector<4x512xf32>
    %cst_52 = arith.constant 5.000000e-01 : f32
    %114 = vector.broadcast %cst_52 : f32 to vector<4x512xf32>
    %115 = arith.mulf %114, %113 : vector<4x512xf32>
    %cst_53 = arith.constant 0.707106769 : f32
    %116 = vector.broadcast %cst_53 : f32 to vector<4x512xf32>
    %117 = arith.mulf %113, %116 : vector<4x512xf32>
    %cst_54 = arith.constant 0.000000e+00 : f32
    %118 = vector.broadcast %cst_54 : f32 to vector<4x512xf32>
    %119 = arith.cmpf olt, %117, %118 : vector<4x512xf32>
    %cst_55 = arith.constant -1.000000e+00 : f32
    %cst_56 = arith.constant 1.000000e+00 : f32
    %120 = vector.broadcast %cst_55 : f32 to vector<4x512xf32>
    %121 = vector.broadcast %cst_56 : f32 to vector<4x512xf32>
    %122 = arith.select %119, %120, %121 : vector<4x512xi1>, vector<4x512xf32>
    %123 = math.absf %117 : vector<4x512xf32>
    %cst_57 = arith.constant 0.327591091 : f32
    %124 = vector.broadcast %cst_57 : f32 to vector<4x512xf32>
    %125 = arith.mulf %124, %123 : vector<4x512xf32>
    %cst_58 = arith.constant 1.000000e+00 : f32
    %126 = vector.broadcast %cst_58 : f32 to vector<4x512xf32>
    %127 = arith.addf %126, %125 : vector<4x512xf32>
    %cst_59 = arith.constant 1.000000e+00 : f32
    %128 = vector.broadcast %cst_59 : f32 to vector<4x512xf32>
    %129 = arith.divf %128, %127 : vector<4x512xf32>
    %cst_60 = arith.constant 1.06140542 : f32
    %130 = vector.broadcast %cst_60 : f32 to vector<4x512xf32>
    %131 = arith.mulf %130, %129 : vector<4x512xf32>
    %cst_61 = arith.constant -1.45315206 : f32
    %132 = vector.broadcast %cst_61 : f32 to vector<4x512xf32>
    %133 = arith.addf %131, %132 : vector<4x512xf32>
    %134 = arith.mulf %133, %129 : vector<4x512xf32>
    %cst_62 = arith.constant 1.42141378 : f32
    %135 = vector.broadcast %cst_62 : f32 to vector<4x512xf32>
    %136 = arith.addf %134, %135 : vector<4x512xf32>
    %137 = arith.mulf %136, %129 : vector<4x512xf32>
    %cst_63 = arith.constant -0.284496725 : f32
    %138 = vector.broadcast %cst_63 : f32 to vector<4x512xf32>
    %139 = arith.addf %137, %138 : vector<4x512xf32>
    %140 = arith.mulf %139, %129 : vector<4x512xf32>
    %cst_64 = arith.constant 0.254829586 : f32
    %141 = vector.broadcast %cst_64 : f32 to vector<4x512xf32>
    %142 = arith.addf %140, %141 : vector<4x512xf32>
    %143 = arith.mulf %142, %129 : vector<4x512xf32>
    %cst_65 = arith.constant 0.000000e+00 : f32
    %144 = vector.broadcast %cst_65 : f32 to vector<4x512xf32>
    %145 = arith.subf %144, %123 : vector<4x512xf32>
    %146 = arith.mulf %145, %123 : vector<4x512xf32>
    %147 = math.exp %146 : vector<4x512xf32>
    %148 = arith.mulf %143, %147 : vector<4x512xf32>
    %cst_66 = arith.constant 1.000000e+00 : f32
    %149 = vector.broadcast %cst_66 : f32 to vector<4x512xf32>
    %150 = arith.subf %149, %148 : vector<4x512xf32>
    %151 = arith.mulf %122, %150 : vector<4x512xf32>
    %cst_67 = arith.constant 1.000000e+00 : f32
    %152 = vector.broadcast %cst_67 : f32 to vector<4x512xf32>
    %153 = arith.addf %152, %151 : vector<4x512xf32>
    %154 = arith.mulf %115, %153 : vector<4x512xf32>
    %c0_68 = arith.constant 0 : index
    %c0_69 = arith.constant 0 : index
    %155 = vector.load %arg15[%c0_68, %c0_69] : memref<1x128xf32, #tpu.memory_space<vmem>>, vector<1x128xf32>
    %156 = arith.truncf %154 : vector<4x512xf32> to vector<4x512xbf16>
    %c0_70 = arith.constant 0 : index
    %c0_71 = arith.constant 0 : index
    %157 = vector.load %arg13[%c0_70, %c0_71] : memref<512x128xbf16, #tpu.memory_space<vmem>>, vector<512x128xbf16>
    %cst_72 = arith.constant dense<0.000000e+00> : vector<4x128xf32>
    %158 = tpu.matmul %156, %157, %cst_72 {dimension_numbers = #tpu.dot_dimension_numbers<[1], [0], [0], [1], [0, 0, 1, 1], [], []>} : vector<4x512xbf16>, vector<512x128xbf16>, vector<4x128xf32> -> vector<4x128xf32>
    %c0_73 = arith.constant 0 : index
    %c0_74 = arith.constant 0 : index
    %159 = vector.load %arg14[%c0_73, %c0_74] : memref<1x128xf32, #tpu.memory_space<vmem>>, vector<1x128xf32>
    %160 = vector.broadcast %159 : vector<1x128xf32> to vector<4x128xf32>
    %161 = arith.addf %158, %160 : vector<4x128xf32>
    %162 = vector.broadcast %155 : vector<1x128xf32> to vector<4x128xf32>
    %163 = arith.mulf %162, %161 : vector<4x128xf32>
    %164 = arith.addf %107, %163 : vector<4x128xf32>
    %165 = vector.shape_cast %164 : vector<4x128xf32> to vector<4x1x128xf32>
    %c0_75 = arith.constant 0 : index
    %c0_76 = arith.constant 0 : index
    %c0_77 = arith.constant 0 : index
    %166 = vector.load %arg18[%c0_75, %c0_76, %c0_77] : memref<4x16x128xf32, #tpu.memory_space<vmem>>, vector<4x1x128xf32>
    tpu.vector_store %arg18[%c0_75, %c0_76, %c0_77], %165 {strides = array<i32>} : memref<4x16x128xf32, #tpu.memory_space<vmem>>, vector<4x1x128xf32>,
    return
  }
  func.func @transform_0(%arg0: i32) -> (i32, i32, i32) {
    %c0_i32 = arith.constant 0 : i32
    %c0_i32_0 = arith.constant 0 : i32
    %c0_i32_1 = arith.constant 0 : i32
    return %arg0, %c0_i32, %c0_i32_0 : i32, i32, i32
  }
  func.func @transform_1(%arg0: i32) -> (i32, i32) {
    %c0_i32 = arith.constant 0 : i32
    %c0_i32_0 = arith.constant 0 : i32
    %c0_i32_1 = arith.constant 0 : i32
    return %c0_i32, %c0_i32_0 : i32, i32
  }
  func.func @transform_2(%arg0: i32) -> (i32, i32) {
    %c0_i32 = arith.constant 0 : i32
    %c0_i32_0 = arith.constant 0 : i32
    %c0_i32_1 = arith.constant 0 : i32
    return %c0_i32, %c0_i32_0 : i32, i32
  }
  func.func @transform_3(%arg0: i32) -> (i32, i32) {
    %c0_i32 = arith.constant 0 : i32
    %c0_i32_0 = arith.constant 0 : i32
    %c0_i32_1 = arith.constant 0 : i32
    return %c0_i32, %c0_i32_0 : i32, i32
  }
  func.func @transform_4(%arg0: i32) -> (i32, i32) {
    %c0_i32 = arith.constant 0 : i32
    %c0_i32_0 = arith.constant 0 : i32
    %c0_i32_1 = arith.constant 0 : i32
    return %c0_i32, %c0_i32_0 : i32, i32
  }
  func.func @transform_5(%arg0: i32) -> (i32, i32) {
    %c0_i32 = arith.constant 0 : i32
    %c0_i32_0 = arith.constant 0 : i32
    %c0_i32_1 = arith.constant 0 : i32
    return %c0_i32, %c0_i32_0 : i32, i32
  }
  func.func @transform_6(%arg0: i32) -> (i32, i32) {
    %c0_i32 = arith.constant 0 : i32
    %c0_i32_0 = arith.constant 0 : i32
    %c0_i32_1 = arith.constant 0 : i32
    return %c0_i32, %c0_i32_0 : i32, i32
  }
  func.func @transform_7(%arg0: i32) -> (i32, i32) {
    %c0_i32 = arith.constant 0 : i32
    %c0_i32_0 = arith.constant 0 : i32
    %c0_i32_1 = arith.constant 0 : i32
    return %c0_i32, %c0_i32_0 : i32, i32
  }
  func.func @transform_8(%arg0: i32) -> (i32, i32) {
    %c0_i32 = arith.constant 0 : i32
    %c0_i32_0 = arith.constant 0 : i32
    %c0_i32_1 = arith.constant 0 : i32
    return %c0_i32, %c0_i32_0 : i32, i32
  }
  func.func @transform_9(%arg0: i32) -> (i32, i32) {
    %c0_i32 = arith.constant 0 : i32
    %c0_i32_0 = arith.constant 0 : i32
    %c0_i32_1 = arith.constant 0 : i32
    return %c0_i32, %c0_i32_0 : i32, i32
  }
  func.func @transform_10(%arg0: i32) -> (i32, i32) {
    %c0_i32 = arith.constant 0 : i32
    %c0_i32_0 = arith.constant 0 : i32
    %c0_i32_1 = arith.constant 0 : i32
    return %c0_i32, %c0_i32_0 : i32, i32
  }
  func.func @transform_11(%arg0: i32) -> (i32, i32) {
    %c0_i32 = arith.constant 0 : i32
    %c0_i32_0 = arith.constant 0 : i32
    %c0_i32_1 = arith.constant 0 : i32
    return %c0_i32, %c0_i32_0 : i32, i32
  }
  func.func @transform_12(%arg0: i32) -> (i32, i32) {
    %c0_i32 = arith.constant 0 : i32
    %c0_i32_0 = arith.constant 0 : i32
    %c0_i32_1 = arith.constant 0 : i32
    return %c0_i32, %c0_i32_0 : i32, i32
  }
  func.func @transform_13(%arg0: i32) -> (i32, i32) {
    %c0_i32 = arith.constant 0 : i32
    %c0_i32_0 = arith.constant 0 : i32
    %c0_i32_1 = arith.constant 0 : i32
    return %c0_i32, %c0_i32_0 : i32, i32
  }
  func.func @transform_14(%arg0: i32) -> (i32, i32) {
    %c0_i32 = arith.constant 0 : i32
    %c0_i32_0 = arith.constant 0 : i32
    %c0_i32_1 = arith.constant 0 : i32
    return %c0_i32, %c0_i32_0 : i32, i32
  }
  func.func @transform_15(%arg0: i32) -> (i32, i32) {
    %c0_i32 = arith.constant 0 : i32
    %c0_i32_0 = arith.constant 0 : i32
    %c0_i32_1 = arith.constant 0 : i32
    return %c0_i32, %c0_i32_0 : i32, i32
  }
  func.func @transform_16(%arg0: i32) -> (i32, i32) {
    %c0_i32 = arith.constant 0 : i32
    %c0_i32_0 = arith.constant 0 : i32
    %c0_i32_1 = arith.constant 0 : i32
    return %c0_i32, %c0_i32_0 : i32, i32
  }
  func.func @transform_17(%arg0: i32) -> (i32, i32, i32) {
    %c0_i32 = arith.constant 0 : i32
    %c0_i32_0 = arith.constant 0 : i32
    %c0_i32_1 = arith.constant 0 : i32
    return %arg0, %c0_i32, %c0_i32_0 : i32, i32, i32
  }
}

</mosaic_0001>

<bundles_post_ra>
// kernel: tpu_custom_call.1
= control target key start
LH: loop header
LB: loop body
LE: loop exit
PB: predicated region body
PF: predicated region fallthrough
CT: control target
= control target key end

     0   :  { %s4313_s0 = inlined_call_operand.vmem [shape: f32[8,16,128], index: 0, kind: input, shape index: {}]   ;;  %s4314_s1 = inlined_call_operand.vmem [shape: f32[1,128], index: 1, kind: input, shape index: {}]   ;;  %s4315_s2 = inlined_call_operand.hbm [shape: f32[1,128], index: 2, kind: input, shape index: {}]   ;;  %s4316_s3 = inlined_call_operand.hbm [shape: bf16[128,128], index: 3, kind: input, shape index: {}]   ;;  %s4317_s4 = inlined_call_operand.hbm [shape: bf16[128,256], index: 4, kind: input, shape index: {}]   ;;  %s4318_s5 = inlined_call_operand.hbm [shape: bf16[128,128], index: 5, kind: input, shape index: {}]   ;;  %s4319_s6 = inlined_call_operand.vmem [shape: f32[1,128], index: 6, kind: input, shape index: {}]   ;;  %s4320_s7 = inlined_call_operand.vmem [shape: f32[1,128], index: 7, kind: input, shape index: {}]   ;;  %s4321_s8 = inlined_call_operand.vmem [shape: f32[1,128], index: 8, kind: input, shape index: {}]   ;;  %s4322_s9 = inlined_call_operand.vmem [shape: f32[1,128], index: 9, kind: input, shape index: {}]   ;;  %s4323_s10 = inlined_call_operand.hbm [shape: bf16[128,512], index: 10, kind: input, shape index: {}]   ;;  %s4324_s11 = inlined_call_operand.vmem [shape: f32[1,512], index: 11, kind: input, shape index: {}]   ;;  %s4325_s12 = inlined_call_operand.hbm [shape: bf16[512,128], index: 12, kind: input, shape index: {}]   ;;  %s4326_s13 = inlined_call_operand.vmem [shape: f32[1,128], index: 13, kind: input, shape index: {}]   ;;  %s4327_s14 = inlined_call_operand.vmem [shape: f32[1,128], index: 14, kind: input, shape index: {}]   ;;  %s4328_s15 = inlined_call_operand.vmem [shape: f32[128,4], index: 15, kind: input, shape index: {}]   ;;  %s4329_s16 = inlined_call_operand.vmem [shape: f32[4,128], index: 16, kind: input, shape index: {}]   ;;  %s4330_s17 = inlined_call_operand.hbm [shape: f32[8,16,128], index: 17, kind: output, shape index: {}]  }
   0x1   :  { %4341 = sst [smem:[#allocation25_spill]] %s4313_s0 }
   0x2   :  { %4342 = sst [smem:[#allocation26_spill]] %s4314_s1 }
   0x3   :  { %4343 = sst [smem:[#allocation27_spill]] %s4330_s17 }
   0x4   :  { %22 = vsyncpa [#allocation3], 0 }
   0x5   :  { %23 = vsyncpa [#allocation6], 0 }
   0x6   :  { %24 = vsyncpa [#allocation9], 0 }
   0x7   :  { %25 = vsyncpa [#allocation12], 0 }
   0x8   :  { %26 = vsyncpa [#allocation4], 0 }
   0x9   :  { %28 = vsyncpa [#allocation4 + $0x1], 0  ;;  %s3704_s24 = smov 0   ;;  %s3706_s25 = smov 0  }
   0xa   :  { %s3708_s26 = smov 0   ;;  %s3710_s27 = smov 0  }
   0xb LB: > { %4344 = sst [smem:[#allocation19_spill]] %s3580_s24  ;;  %s3725_s28 = sadd.s32 4294967295, %s3592_s27   ;;  %s3592_s27 = sphi %s3710_s27, %s4372_s27   ;;  %s3588_s26 = sphi %s3708_s26, %s4377_s26   ;;  %s3584_s25 = sphi %s3706_s25, %s4376_s25   ;;  %s3580_s24 = sphi %s3704_s24, %s4375_s24  }
   0xc   : > { %4345 = sst [smem:[#allocation20_spill]] %s3588_s26  ;;  %s2729_s29 = sadd.s32 4294967294, %s3592_s27  }
   0xd   : > { %4346 = sst [smem:[#allocation21_spill]] %s3592_s27  ;;  %s3729_s0 = sadd.s32 1, %s3592_s27  }
   0xe   : > { %4347 = sst [smem:[#allocation22_spill]] %s3729_s0  ;;  %s403_s30 = sadd.s32 1, %s3588_s26 }
   0xf   : > { %s400_s18 = ssub.s32 %s3592_s27, %s3729_s0  ;;  %p413_p0 = scmp.ne.s32.totalorder %s3588_s26, %s3584_s25 }
  0x10   : > { %p401_p1 = scmp.eq.s32.totalorder %s400_s18, 0  ;;  %p414_p2 = scmp.eq.s32.totalorder %s3725_s28, 1 }
  0x11   : > { %p419_p3 = scmp.ne.s32.totalorder %s3584_s25, %s3580_s24  ;;  %p420_p4 = scmp.eq.s32.totalorder %s2729_s29, 1 }
  0x12   : > { %s3740_s19 = scalar_select %p401_p1, %s3588_s26, %s403_s30  }
  0x13   : > { %p3742_p5 = por %p414_p2, %p413_p0  ;;  %p3746_p6 = por %p420_p4, %p419_p3 }
  0x14   : > { %4348 = sst [smem:[#allocation23_spill]] %s3740_s19  ;;  %p2730_p7 = scmp.ge.s32.totalorder %s3592_s27, 1 }
  0x15   : > { %s4350_s20 = scalar_select %p3746_p6, 1, 0 }
  0x16   : > { %p427_p8 = scmp.lt.s32.totalorder %s3592_s27, 3  ;;  %p4338_p9 = scmp.eq.s32.totalorder %s3725_s28, 0 }
  0x17   : > { %4351 = sst [smem:[#allocation24_spill]] %s4350_s20  ;;  %s3594_s22 = smov [#allocation5]  }
  0x18   : > { %p3753_p10 = pnand %p2730_p7, %p427_p8  ;;  %s453_s23 = sshll.u32 %s3594_s22, 4  ;;  %s454_s23 = int_to_ptr.vmem [resolvable:$true] %s453_s23 }
  0x19   : > { %s3595_s30 = smov [#allocation8]   ;;  %s3596_s19 = smov [#allocation2]  }
  0x1a   : > { %p3091_p11 = pneg %p3753_p10  ;;  %s479_s18 = sshll.u32 %s3595_s30, 4  ;;  %s480_s18 = int_to_ptr.vmem [resolvable:$true] %s479_s18 }
  0x1b   : > { %s443_s26 = sshll.u32 %s3596_s19, 4  ;;  %s3371_s22 = scalar_lea.vmem %s454_s23, 1024  ;;  %s444_s26 = int_to_ptr.vmem [resolvable:$true] %s443_s26 }
  0x1c   : > { %p3761_p12 = pnand %p4338_p9, %p3091_p11  ;;  %p3372_p0 = scmp.ne.s32.totalorder %s454_s23, %s3371_s22 }
  0x1d   : > { %p3379_p3 = scmp.lt.s32.totalorder %s454_s23, %s454_s23  ;;  %p3380_p4 = scmp.lt.s32.totalorder %s3371_s22, %s3371_s22 }
  0x1e   : > { %p3767_p13 = pneg %p3761_p12 }
  0x1f   : > { %p3381_p7 = por %p3380_p4, %p3379_p3 }
  0x20   : > { %p3374_p1 = pnand %p3372_p0, %p3767_p13 }
  0x22   : > { %p3375_p2 = pneg %p3374_p1 }
  0x24   : > { %p3382_p8 = pnand %p3381_p7, %p3375_p2 }
  0x26   : > { %3385 = shalt.err (!%p3382_p8)
}
  0x27   : > { %s4339_s30 = smov 64   ;;  %s4340_s19 = smov 4  }
  0x28   : > { %3097 = dma.hbm_to_vmem [thread:$0]  (!%p3761_p12), %s4316_s3, 1024, %s454_s23, [#allocation6], %s4339_s30, %s4339_s30, %s4340_s19  }
  0x29   : > { %s3397_s27 = scalar_lea.vmem %s480_s18, 1024  ;;  %p3405_p3 = scmp.lt.s32.totalorder %s480_s18, %s480_s18 }
  0x2a   : > { %p3398_p11 = scmp.ne.s32.totalorder %s480_s18, %s3397_s27  ;;  %p3406_p2 = scmp.lt.s32.totalorder %s3397_s27, %s3397_s27 }
  0x2c   : > { %p3400_p0 = pnand %p3398_p11, %p3767_p13  ;;  %p3407_p4 = por %p3406_p2, %p3405_p3 }
  0x2e   : > { %p3401_p1 = pneg %p3400_p0 }
  0x30   : > { %p3408_p7 = pnand %p3407_p4, %p3401_p1 }
  0x32   : > { %3411 = shalt.err (!%p3408_p7)
}
  0x33   : > { %3103 = dma.hbm_to_vmem [thread:$0]  (!%p3761_p12), %s4318_s5, 1024, %s480_s18, [#allocation9], %s4339_s30, %s4339_s30, %s4340_s19  }
  0x34   : > { %s3423_s24 = scalar_lea.vmem %s444_s26, 16  ;;  %s3430_s27 = scalar_lea.vmem %s444_s26, 32 }
  0x35   : > { %p3424_p8 = scmp.ne.s32.totalorder %s444_s26, %s3423_s24  ;;  %p3431_p3 = scmp.lt.s32.totalorder %s444_s26, %s444_s26 }
  0x36   : > { %p3432_p1 = scmp.lt.s32.totalorder %s3430_s27, %s3423_s24 }
  0x37   : > { %p3426_p11 = pnand %p3424_p8, %p3767_p13 }
  0x38   : > { %p3433_p2 = por %p3432_p1, %p3431_p3 }
  0x39   : > { %p3427_p0 = pneg %p3426_p11 }
  0x3b   : > { %p3434_p4 = pnand %p3433_p2, %p3427_p0 }
  0x3d   : > { %3437 = shalt.err (!%p3434_p4)
}
  0x3e   : > { %3094 = dma.hbm_to_vmem [thread:$0]  (!%p3761_p12), %s4315_s2, 16, %s444_s26, [#allocation3]  }
  0x3f   : > { %s3599_s17 = smov [#allocation7]  }
  0x40   : > { %s466_s18 = sshll.u32 %s3599_s17, 4  ;;  %s467_s18 = int_to_ptr.vmem [resolvable:$true] %s466_s18 }
  0x41   : > { %s3449_s22 = scalar_lea.vmem %s467_s18, 2048  ;;  %p3457_p9 = scmp.lt.s32.totalorder %s467_s18, %s467_s18 }
  0x42   : > { %p3450_p7 = scmp.ne.s32.totalorder %s467_s18, %s3449_s22  ;;  %p3458_p6 = scmp.lt.s32.totalorder %s3449_s22, %s3449_s22 }
  0x44   : > { %p3452_p8 = pnand %p3450_p7, %p3767_p13  ;;  %p3459_p3 = por %p3458_p6, %p3457_p9 }
  0x46   : > { %p3453_p11 = pneg %p3452_p8 }
  0x48   : > { %p3460_p0 = pnand %p3459_p3, %p3453_p11 }
  0x4a   : > { %3463 = shalt.err (!%p3460_p0)
}
  0x4b   : > { %s3600_s24 = smov 128   ;;  %s3601_s27 = smov 8  }
  0x4c   : > { %3100 = dma.hbm_to_vmem [thread:$0]  (!%p3761_p12), %s4317_s4, 2048, %s467_s18, [#allocation6], %s3600_s24, %s3600_s24, %s3601_s27  }
  0x4d   : > { %s3602_s23 = smov [#allocation10]  }
  0x4e   : > { %s504_s17 = sshll.u32 %s3602_s23, 4  ;;  %s505_s17 = int_to_ptr.vmem [resolvable:$true] %s504_s17 }
  0x4f   : > { %s3475_s30 = scalar_lea.vmem %s505_s17, 4096  ;;  %p3483_p6 = scmp.lt.s32.totalorder %s505_s17, %s505_s17 }
  0x50   : > { %p3476_p1 = scmp.ne.s32.totalorder %s505_s17, %s3475_s30  ;;  %p3484_p9 = scmp.lt.s32.totalorder %s3475_s30, %s3475_s30 }
  0x52   : > { %p3478_p2 = pnand %p3476_p1, %p3767_p13  ;;  %p3485_p7 = por %p3484_p9, %p3483_p6 }
  0x54   : > { %p3479_p4 = pneg %p3478_p2 }
  0x56   : > { %p3486_p8 = pnand %p3485_p7, %p3479_p4 }
  0x58   : > { %3489 = shalt.err (!%p3486_p8)
}
  0x59   : > { %s3603_s22 = smov 256   ;;  %s3604_s19 = smov 16  }
  0x5a   : > { %3106 = dma.hbm_to_vmem [thread:$0]  (!%p3761_p12), %s4323_s10, 4096, %s505_s17, [#allocation9], %s3603_s22, %s3603_s22, %s3604_s19  }
  0x5b   : > { %s3605_s24 = smov [#allocation11]  }
  0x5c   : > { %s520_s27 = sshll.u32 %s3605_s24, 4  ;;  %s521_s27 = int_to_ptr.vmem [resolvable:$true] %s520_s27 }
  0x5d   : > { %s3501_s26 = scalar_lea.vmem %s521_s27, 4096  ;;  %p3509_p1 = scmp.lt.s32.totalorder %s521_s27, %s521_s27 }
  0x5e   : > { %p3502_p11 = scmp.ne.s32.totalorder %s521_s27, %s3501_s26  ;;  %p3510_p2 = scmp.lt.s32.totalorder %s3501_s26, %s3501_s26 }
  0x60   : > { %p3504_p3 = pnand %p3502_p11, %p3767_p13  ;;  %p3511_p4 = por %p3510_p2, %p3509_p1 }
  0x62   : > { %p3505_p0 = pneg %p3504_p3 }
  0x64   : > { %p3512_p6 = pnand %p3511_p4, %p3505_p0 }
  0x66   : > { %3515 = shalt.err (!%p3512_p6)
}
  0x67   : > { %s4355_s30 = smov 4   ;;  %s4356_s23 = smov 64  }
  0x68   : > { %3109 = dma.hbm_to_vmem [thread:$0]  (!%p3761_p12), %s4325_s12, 4096, %s521_s27, [#allocation12], %s4356_s23, %s4356_s23, %s4355_s30  }
  0x69   : > { %558 = sbr.rel (%p3753_p10) target bundleno = 2155 (0x86b), region = 88  ;;  %p4357_p13 = scmp.eq.s32.totalorder (!%p3753_p10), %s3725_s28, 0 }
  0x6e   : > { %3559 = dma.done.wait (%p4357_p13), [#allocation3], 16   ;;  %p4358_p9 = pmov %p4357_p13 }
  0x70   : > { %3561 = vsyncadd (%p4358_p9), [#allocation3], 4294967280  ;;  %p4359_p7 = pmov %p4358_p9 }
  0x72   : > { %3563 = dma.done.wait (%p4359_p7), [#allocation6], 3072   ;;  %p4360_p8 = pmov %p4359_p7 }
  0x73   : > { %p4361_p11 = pmov %p4359_p7 }
  0x74   : > { %3565 = vsyncadd (%p4360_p8), [#allocation6], 4294964224 }
  0x75   : > { %3567 = dma.done.wait (%p4361_p11), [#allocation9], 5120   ;;  %p4362_p12 = pmov %p4359_p7 }
  0x76   : > { %p4363_p10 = pmov %p4359_p7 }
  0x77   : > { %3569 = vsyncadd (%p4362_p12), [#allocation9], 4294962176 }
  0x78   : > { %3571 = dma.done.wait (%p4363_p10), [#allocation12], 4096   ;;  %p4364_p3 = pmov %p4359_p7 }
  0x79   : > { %s2746_s0 = sshll.u32 %s3725_s28, 2  ;;  %s4365_s22 = sld [smem:[#allocation25_spill]]  ;;  %v3178_v8 = vld [vmem:[#allocation7 + $0x74] ss:$8 sps:$4 sm:$0xff]   ;;  %v3180_v9 = vld [vmem:[#allocation7 + $0x70] ss:$8 sps:$4 sm:$0xff]  }
  0x7a   : > { %3573 = vsyncadd (%p4364_p3), [#allocation12], 4294963200  ;;  %p632_p0 = scmp.lt.s32.totalorder %s2746_s0, 7  ;;  %906 = vmatprep.subr.bf16.mxu0 %v3178_v8  ;;  %v3181_v41 = vld [vmem:[#allocation7 + $0x64] ss:$8 sps:$4 sm:$0xff]   ;;  %v3190_v48 = vld [vmem:[#allocation5 + $0x38] sm:$0xff]  }
  0x7b   : > { %907 = vmatpush1.bf16.msra.mxu0 %v3180_v9  ;;  %v3183_v42 = vld [vmem:[#allocation7 + $0x60] ss:$8 sps:$4 sm:$0xff]   ;;  %v3184_v44 = vld [vmem:[#allocation7 + $0x54] ss:$8 sps:$4 sm:$0xff]   ;;  %v3186_v45 = vld [vmem:[#allocation7 + $0x50] ss:$8 sps:$4 sm:$0xff]  }
  0x7c   : > { %s4379_s0 = smov (!%p632_p0, %s2746_s0), 7  ;;  %908 = vmatprep.subr.bf16.mxu0 %v3181_v41  ;;  %v3187_v46 = vld [vmem:[#allocation7 + $0x44] ss:$8 sps:$4 sm:$0xff]   ;;  %v3189_v47 = vld [vmem:[#allocation7 + $0x40] ss:$8 sps:$4 sm:$0xff]   ;;  %v3606_v49 = vmov 0.0  }
  0x7d   : > { %s2869_s21 = sshll.u32 %s4379_s0, 4  ;;  %2967 = vmatprep.subr.bf16.mxu1 %v3606_v49  ;;  %v3191_v50 = vld [vmem:[#allocation7 + $0x34] ss:$8 sps:$4 sm:$0xff]   ;;  %v3193_v51 = vld [vmem:[#allocation7 + $0x30] ss:$8 sps:$4 sm:$0xff]   ;;  %v3198_v55 = vld [vmem:[#allocation5 + $0x28] sm:$0xff]  }
  0x7e   : > { %2968 = vmatpush3.bf16.msra.mxu1 %v3190_v48  ;;  %v3194_v52 = vld [vmem:[#allocation5 + $0x30] sm:$0xff]   ;;  %v3195_v53 = vld [vmem:[#allocation7 + $0x24] ss:$8 sps:$4 sm:$0xff]   ;;  %v3197_v54 = vld [vmem:[#allocation7 + $0x20] ss:$8 sps:$4 sm:$0xff]   ;;  %v3607_v62 = vmov 0  }
  0x7f   : > { %s3844_s18 = scalar_lea.vmem %s4365_s22, %s2869_s21  ;;  %909 = vmatpush1.bf16.msra.mxu0 %v3183_v42  ;;  %2969 = vmatprep.subr.bf16.mxu1 %v3606_v49  ;;  %v3199_v56 = vld [vmem:[#allocation7 + $0x14] ss:$8 sps:$4 sm:$0xff]   ;;  %v3201_v57 = vld [vmem:[#allocation7 + $0x10] ss:$8 sps:$4 sm:$0xff]   ;;  %v3202_v58 = vld [vmem:[#allocation5 + $0x20] sm:$0xff]   ;;  %vm3608_vm0 = vmmov 0  }
  0x80   : > { %v3847_v0 = vld [vmem:[%s3844_s18] sm:$0xff]  ;;  %v3850_v1 = vld [vmem:[%s3844_s18 + $0x10] sm:$0xff]  ;;  %v3855_v2 = vld [vmem:[%s3844_s18 + $0x8] sm:$0xff]  ;;  %910 = vmatprep.subr.bf16.mxu0 %v3184_v44  ;;  %938 = vmatprep.mubr.bf16.mxu0 %v3607_v62  ;;  %s4366_s23 = sld [smem:[#allocation26_spill]]  ;;  %s628_s20 = sand.u32 1, %s3584_s25   ;;  %vm1008_vm1 = vcmask 1041409  }
  0x81   : > { %650 = vadd.xlane.f32.xlu0 %v3847_v0  ;;  %654 = vadd.xlane.f32.xlu1 %v3850_v1  ;;  %v3858_v3 = vld [vmem:[%s3844_s18 + $0x20] sm:$0xff]  ;;  %v3861_v4 = vld [vmem:[%s3844_s18 + $0x30] sm:$0xff]  ;;  %v3864_v5 = vld [vmem:[%s3844_s18 + $0x18] sm:$0xff]  ;;  %s2745_s21 = sshll.u32 %s628_s20, 6  ;;  %vm1011_vm2 = vcmask 1042434   ;;  %vm1014_vm3 = vcmask 1043459  }
  0x82   : > { %v3869_v6 = vld [vmem:[%s3844_s18 + $0x28] sm:$0xff]  ;;  %v3872_v7 = vld [vmem:[%s3844_s18 + $0x38] sm:$0xff]  ;;  %2970 = vmatpush3.bf16.msra.mxu1 %v3194_v52  ;;  %2983 = vmatprep.mubr.msk.bf16.mxu1 %vm3608_vm0, %v3606_v49  ;;  %s3976_s22 = scalar_lea.vmem [#allocation13], %s2745_s21  ;;  %vm1422_vm4 = vcmask 1043456   ;;  %vm1288_vm5 = vcmask 31744   ;;  %s2871_s27 = sshll.u32 %s3725_s28, 10 }
  0x83   : > { %911 = vmatpush1.bf16.msra.mxu0 %v3186_v45  ;;  %2971 = vmatprep.subr.bf16.mxu1 %v3606_v49  ;;  %v3203_v59 = vld [vmem:[#allocation7 + $0x4] ss:$8 sps:$4 sm:$0xff]   ;;  %v3205_v60 = vld [vmem:[#allocation7] ss:$8 sps:$4 sm:$0xff]   ;;  %v3206_v61 = vld [vmem:[#allocation5 + $0x18] sm:$0xff]   ;;  %s4273_s28 = scalar_lea.sflag [#allocation4], %s628_s20 }
  0x84   : > { %912 = vmatprep.subr.bf16.mxu0 %v3187_v46  ;;  %v3207_v63 = vld [vmem:[#allocation5 + $0x10] sm:$0xff]   ;;  %v3208_v8 = vld [vmem:[#allocation5 + $0x8] sm:$0xff]   ;;  %v3209_v9 = vld [vmem:[#allocation5] sm:$0xff]   ;;  %s3611_s21 = smov [#allocation13]  }
  0x85   : > { %652 = vadd.xlane.f32.xlu0 %v3855_v2  ;;  %658 = vadd.xlane.f32.xlu1 %v3858_v3  ;;  %v3941_v46 = vld [vmem:[#allocation2] ss:$0 sm:$0xff]  ;;  %s3520_s29 = sshll.u32 %s3611_s21, 4  ;;  %s3521_s29 = int_to_ptr.vmem [resolvable:$false] %s3520_s29 }
  0x86   : > { %2972 = vmatpush3.bf16.msra.mxu1 %v3198_v55  ;;  %s3522_s17 = scalar_lea.vmem %s3521_s29, 2048 }
  0x87   : > { %913 = vmatpush1.bf16.msra.mxu0 %v3189_v47  ;;  %2973 = vmatprep.subr.bf16.mxu1 %v3606_v49 }
  0x88   : > { %914 = vmatprep.subr.bf16.mxu0 %v3191_v50  ;;  %v3948_v50 = vld [vmem:[%s4320_s7] ss:$0 sm:$0xff] }
  0x89   : > { %662 = vadd.xlane.f32.xlu0 %v3861_v4  ;;  %656 = vadd.xlane.f32.xlu1 %v3864_v5 }
  0x8a   : > { %2974 = vmatpush3.bf16.msra.mxu1 %v3202_v58 }
  0x8b   : > { %915 = vmatpush1.bf16.msra.mxu0 %v3193_v51  ;;  %2975 = vmatprep.subr.bf16.mxu1 %v3606_v49 }
  0x8c   : > { %916 = vmatprep.subr.bf16.mxu0 %v3195_v53 }
  0x8d   : > { %660 = vadd.xlane.f32.xlu0 %v3869_v6  ;;  %664 = vadd.xlane.f32.xlu1 %v3872_v7 }
  0x8e   : > { %2976 = vmatpush3.bf16.msra.mxu1 %v3206_v61 }
  0x8f   : > { %917 = vmatpush1.bf16.msra.mxu0 %v3197_v54  ;;  %2977 = vmatprep.subr.bf16.mxu1 %v3606_v49 }
  0x90   : > { %918 = vmatprep.subr.bf16.mxu0 %v3199_v56 }
  0x92   : > { %2978 = vmatpush3.bf16.msra.mxu1 %v3207_v63 }
  0x93   : > { %919 = vmatpush1.bf16.msra.mxu0 %v3201_v57  ;;  %2979 = vmatprep.subr.bf16.mxu1 %v3606_v49 }
  0x94   : > { %920 = vmatprep.subr.bf16.mxu0 %v3203_v59 }
  0x96   : > { %2980 = vmatpush3.bf16.msra.mxu1 %v3208_v8 }
  0x97   : > { %921 = vmatpush1.bf16.msra.mxu0 %v3205_v60  ;;  %2981 = vmatprep.subr.bf16.mxu1 %v3606_v49 }
  0x9a   : > { %2982 = vmatpush3.bf16.msra.mxu1 %v3209_v9 }
 0x10a   : > { %v651_v10 = vpop.xlane.xlu0 %650  ;;  %v655_v11 = vpop.xlane.xlu1 %654 }
 0x10b   : > { %v667_v12 = vmul.f32 0.0078125, %v651_v10  ;;  %v669_v13 = vmul.f32 0.0078125, %v655_v11  ;;  %v3932_v10 = vld [vmem:[%s4328_s15 + $0x78] sm:$0xff] }
 0x10c   : > { %2987 = vmatprep.subr.mxu0 %v3932_v10 }
 0x10d   : > { %v3879_v14 = vsub.f32 %v3847_v0, %v667_v12  ;;  %v3882_v15 = vsub.f32 %v3850_v1, %v669_v13 }
 0x10e   : > { %v653_v16 = vpop.xlane.xlu0 %652  ;;  %v659_v17 = vpop.xlane.xlu1 %658 }
 0x10f   : > { %v668_v18 = vmul.f32 0.0078125, %v653_v16  ;;  %v683_v19 = vmul.f32 %v3879_v14, %v3879_v14  ;;  %v671_v20 = vmul.f32 0.0078125, %v659_v17  ;;  %v685_v23 = vmul.f32 %v3882_v15, %v3882_v15 }
 0x111   : > { %v3887_v21 = vsub.f32 %v3855_v2, %v668_v18  ;;  %691 = vadd.xlane.f32.xlu0 %v683_v19  ;;  %v3890_v22 = vsub.f32 %v3858_v3, %v671_v20 }
 0x112   : > { %v663_v24 = vpop.xlane.xlu0 %662  ;;  %v657_v25 = vpop.xlane.xlu1 %656 }
 0x113   : > { %v673_v26 = vmul.f32 0.0078125, %v663_v24  ;;  %v684_v27 = vmul.f32 %v3887_v21, %v3887_v21  ;;  %v670_v28 = vmul.f32 0.0078125, %v657_v25  ;;  %v687_v31 = vmul.f32 %v3890_v22, %v3890_v22 }
 0x115   : > { %v3897_v29 = vsub.f32 %v3861_v4, %v673_v26  ;;  %695 = vadd.xlane.f32.xlu0 %v685_v23  ;;  %693 = vadd.xlane.f32.xlu1 %v684_v27  ;;  %v3900_v30 = vsub.f32 %v3864_v5, %v670_v28 }
 0x116   : > { %v661_v32 = vpop.xlane.xlu0 %660  ;;  %v665_v33 = vpop.xlane.xlu1 %664 }
 0x117   : > { %v672_v34 = vmul.f32 0.0078125, %v661_v32  ;;  %v689_v35 = vmul.f32 %v3897_v29, %v3897_v29  ;;  %v674_v36 = vmul.f32 0.0078125, %v665_v33  ;;  %v686_v39 = vmul.f32 %v3900_v30, %v3900_v30 }
 0x119   : > { %v3907_v37 = vsub.f32 %v3869_v6, %v672_v34  ;;  %699 = vadd.xlane.f32.xlu1 %v687_v31  ;;  %703 = vadd.xlane.f32.xlu0 %v689_v35  ;;  %v3910_v38 = vsub.f32 %v3872_v7, %v674_v36 }
 0x11b   : > { %v688_v40 = vmul.f32 %v3907_v37, %v3907_v37  ;;  %v690_v43 = vmul.f32 %v3910_v38, %v3910_v38 }
 0x11d   : > { %697 = vadd.xlane.f32.xlu1 %v686_v39  ;;  %701 = vadd.xlane.f32.xlu0 %v688_v40 }
 0x121   : > { %705 = vadd.xlane.f32.xlu1 %v690_v43  ;;  %v3938_v43 = vld [vmem:[%s4366_s23] ss:$0 sm:$0xff]  ;;  %s4367_s23 = sld [smem:[#allocation27_spill]] }
 0x127   : > { %s4260_s19 = scalar_lea.hbm %s4367_s23, %s2871_s27 }
 0x19a   : > { %v692_v11 = vpop.xlane.xlu0 %691 }
 0x19b   : > { %v707_v12 = vmul.f32 0.0078125, %v692_v11 }
 0x19d   : > { %v715_v13 = vadd.f32 1e-05, %v707_v12 }
 0x19e   : > { %v694_v16 = vpop.xlane.xlu1 %693  ;;  %v696_v17 = vpop.xlane.xlu0 %695 }
 0x19f   : > { %3298 = vrsqrt.f32 %v715_v13  ;;  %v708_v18 = vmul.f32 0.0078125, %v694_v16  ;;  %v709_v19 = vmul.f32 0.0078125, %v696_v17  ;;  %v1173_v16 = vld [vmem:[%s4328_s15 + $0x70] sm:$0xff] }
 0x1a1   : > { %v716_v20 = vadd.f32 1e-05, %v708_v18  ;;  %v717_v23 = vadd.f32 1e-05, %v709_v19 }
 0x1a2   : > { %v700_v24 = vpop.xlane.xlu1 %699  ;;  %v704_v25 = vpop.xlane.xlu0 %703 }
 0x1a3   : > { %3300 = vrsqrt.f32 %v716_v20  ;;  %v711_v26 = vmul.f32 0.0078125, %v700_v24  ;;  %v713_v27 = vmul.f32 0.0078125, %v704_v25 }
 0x1a4   : > { %3302 = vrsqrt.f32 %v717_v23 }
 0x1a5   : > { %v719_v28 = vadd.f32 1e-05, %v711_v26  ;;  %v721_v31 = vadd.f32 1e-05, %v713_v27 }
 0x1a6   : > { %v698_v32 = vpop.xlane.xlu1 %697  ;;  %v702_v33 = vpop.xlane.xlu0 %701 }
 0x1a7   : > { %3304 = vrsqrt.f32 %v719_v28  ;;  %v710_v34 = vmul.f32 0.0078125, %v698_v32  ;;  %v712_v35 = vmul.f32 0.0078125, %v702_v33 }
 0x1a8   : > { %3306 = vrsqrt.f32 %v721_v31 }
 0x1a9   : > { %v718_v36 = vadd.f32 1e-05, %v710_v34  ;;  %v720_v39 = vadd.f32 1e-05, %v712_v35  ;;  %v1171_v35 = vld [vmem:[%s4328_s15 + $0x60] sm:$0xff] }
 0x1aa   : > { %v706_v40 = vpop.xlane.xlu1 %705 }
 0x1ab   : > { %3308 = vrsqrt.f32 %v718_v36  ;;  %v714_v41 = vmul.f32 0.0078125, %v706_v40 }
 0x1ac   : > { %v3299_v42 = vpop.eup %3298  ;;  %3310 = vrsqrt.f32 %v720_v39 }
 0x1ad   : > { %v722_v44 = vadd.f32 1e-05, %v714_v41  ;;  %v731_v45 = vmul.f32 %v3299_v42, %v3879_v14 }
 0x1af   : > { %3312 = vrsqrt.f32 %v722_v44  ;;  %v745_v47 = vmul.f32 %v3938_v43, %v731_v45 }
 0x1b0   : > { %v3301_v48 = vpop.eup %3300 }
 0x1b1   : > { %v3303_v51 = vpop.eup %3302  ;;  %v732_v52 = vmul.f32 %v3301_v48, %v3887_v21  ;;  %v759_v53 = vadd.f32 %v3941_v46, %v745_v47  ;;  %v1170_v48 = vld [vmem:[%s4328_s15 + $0x58] sm:$0xff] }
 0x1b2   : > { %v733_v54 = vmul.f32 %v3303_v51, %v3882_v15 }
 0x1b3   : > { %v746_v14 = vmul.f32 %v3938_v43, %v732_v52  ;;  %v774_v55 = vmul.f32 %v3948_v50, %v759_v53  ;;  %v979_v61 = vpack.c.bf16 %v759_v53, %v759_v53 }
 0x1b4   : > { %v3305_v56 = vpop.eup %3304  ;;  %v747_v57 = vmul.f32 %v3938_v43, %v733_v54 }
 0x1b5   : > { %v3307_v58 = vpop.eup %3306  ;;  %v735_v59 = vmul.f32 %v3305_v56, %v3890_v22  ;;  %v760_v60 = vadd.f32 %v3941_v46, %v746_v14  ;;  %v782_v21 = vadd.f32 %v774_v55, %v3847_v0  ;;  %v1003_v23 = vunpack.c.l.b16 %v979_v61 }
 0x1b6   : > { %v737_v63 = vmul.f32 %v3307_v58, %v3897_v29  ;;  %v3963_v15 = vadd.f32 %v3941_v46, %v747_v57  ;;  %v1169_v57 = vld [vmem:[%s4328_s15 + $0x50] sm:$0xff] }
 0x1b7   : > { %v749_v8 = vmul.f32 %v3938_v43, %v735_v59  ;;  %v775_v9 = vmul.f32 %v3948_v50, %v760_v60  ;;  %v790_v11 = vadd.f32 %v782_v21, %v782_v21  ;;  %v806_v12 = vpack.c.bf16 %v760_v60, %v759_v53 }
 0x1b8   : > { %v3309_v13 = vpop.eup %3308  ;;  %v776_v22 = vmul.f32 %v3948_v50, %v3963_v15  ;;  %v980_v0 = vpack.c.bf16 %v3963_v15, %v3963_v15  ;;  %v751_v29 = vmul.f32 %v3938_v43, %v737_v63 }
 0x1b9   : > { %v3311_v17 = vpop.eup %3310  ;;  %v783_v18 = vadd.f32 %v775_v9, %v3855_v2  ;;  %798 = vst [vmem:[%s3976_s22] sm:$0xff] %v790_v11  ;;  %939 = vmatmul.mubr.bf16.vlgmr.msra.gmra.mxu0 %v806_v12  ;;  %v734_v19 = vmul.f32 %v3309_v13, %v3900_v30  ;;  %v3981_v20 = vadd.f32 %v3941_v46, %v749_v8  ;;  %v1172_v30 = vld [vmem:[%s4328_s15 + $0x68] sm:$0xff]  ;;  %v1166_v11 = vld [vmem:[%s4328_s15 + $0x38] sm:$0xff]  ;;  %v1165_v12 = vld [vmem:[%s4328_s15 + $0x30] sm:$0xff] }
 0x1ba   : > { %948 = vmatprep.mubr.bf16.mxu0 %v3607_v62  ;;  %v784_v24 = vadd.f32 %v776_v22, %v3850_v1  ;;  %v1004_v25 = vunpack.c.l.b16 %v980_v0  ;;  %v3986_v26 = vadd.f32 %v3941_v46, %v751_v29  ;;  %v736_v2 = vmul.f32 %v3311_v17, %v3907_v37  ;;  %2988 = vmatpush3.msra.mxu0 %v3932_v10  ;;  %v1164_v13 = vld [vmem:[%s4328_s15 + $0x28] sm:$0xff]  ;;  %v1163_v22 = vld [vmem:[%s4328_s15 + $0x20] sm:$0xff]  ;;  %v1162_v0 = vld [vmem:[%s4328_s15 + $0x18] sm:$0xff] }
 0x1bb   : > { %v791_v27 = vadd.f32 %v783_v18, %v783_v18  ;;  %v748_v28 = vmul.f32 %v3938_v43, %v734_v19  ;;  %v778_v31 = vmul.f32 %v3948_v50, %v3981_v20  ;;  %v981_v1 = vpack.c.bf16 %v3981_v20, %v3981_v20  ;;  %2989 = vmatprep.subr.mxu0 %v1173_v16  ;;  %v1161_v29 = vld [vmem:[%s4328_s15 + $0x10] sm:$0xff]  ;;  %v1159_v17 = vld [vmem:[%s4328_s15] sm:$0xff] }
 0x1bc   : > { %v3313_v32 = vpop.eup %3312  ;;  %v792_v33 = vadd.f32 %v784_v24, %v784_v24  ;;  %v780_v37 = vmul.f32 %v3948_v50, %v3986_v26  ;;  %v982_v10 = vpack.c.bf16 %v3986_v26, %v3986_v26  ;;  %v1007_v34 = vrot.slane %v1004_v25, 7  ;;  %2990 = vmatpush3.msra.mxu0 %v1173_v16  ;;  %v1160_v16 = vld [vmem:[%s4328_s15 + $0x8] sm:$0xff] }
 0x1bd   : > { %799 = vst [vmem:[%s3976_s22 + $0x8] sm:$0xff] %v791_v27  ;;  %v762_v36 = vadd.f32 %v3941_v46, %v748_v28  ;;  %v786_v39 = vadd.f32 %v778_v31, %v3858_v3  ;;  %v1005_v40 = vunpack.c.l.b16 %v981_v1  ;;  %v750_v41 = vmul.f32 %v3938_v43, %v736_v2  ;;  %2991 = vmatprep.subr.mxu0 %v1172_v30 }
 0x1be   : > { %800 = vst [vmem:[%s3976_s22 + $0x10] sm:$0xff] %v792_v33  ;;  %v788_v42 = vadd.f32 %v780_v37, %v3861_v4  ;;  %v1006_v44 = vunpack.c.l.b16 %v982_v10  ;;  %v1009_v45 = vsel %vm1008_vm1, %v1007_v34, %v1003_v23  ;;  %v738_v47 = vmul.f32 %v3313_v32, %v3910_v38  ;;  %2992 = vmatpush3.msra.mxu0 %v1172_v30 }
 0x1bf   : > { %v777_v3 = vmul.f32 %v3948_v50, %v762_v36  ;;  %v807_v51 = vpack.c.bf16 %v762_v36, %v3963_v15  ;;  %v794_v52 = vadd.f32 %v786_v39, %v786_v39  ;;  %v1010_v53 = vrot.slane %v1005_v40, 6  ;;  %2993 = vmatprep.subr.mxu0 %v1171_v35 }
 0x1c0   : > { %v796_v4 = vadd.f32 %v788_v42, %v788_v42  ;;  %v1013_v54 = vrot.slane %v1006_v44, 5  ;;  %v764_v14 = vadd.f32 %v3941_v46, %v750_v41  ;;  %v752_v38 = vmul.f32 %v3938_v43, %v738_v47  ;;  %2994 = vmatpush3.msra.mxu0 %v1171_v35 }
 0x1c1   : > { %v785_v55 = vadd.f32 %v777_v3, %v3864_v5  ;;  %949 = vmatmul.mubr.bf16.gmra.mxu0 %v807_v51  ;;  %v1012_v56 = vsel %vm1011_vm2, %v1010_v53, %v1009_v45  ;;  %802 = vst [vmem:[%s3976_s22 + $0x20] sm:$0xff] %v794_v52  ;;  %2995 = vmatprep.subr.mxu0 %v1170_v48  ;;  %v3609_v19 = vmov 1966171168   ;;  %v1110_v23 = vlaneseq }
 0x1c2   : > { %804 = vst [vmem:[%s3976_s22 + $0x30] sm:$0xff] %v796_v4  ;;  %v1015_v58 = vsel %vm1014_vm3, %v1013_v54, %v1012_v56  ;;  %958 = vmatprep.mubr.bf16.mxu0 %v3607_v62  ;;  %v779_v43 = vmul.f32 %v3948_v50, %v764_v14  ;;  %v766_v5 = vadd.f32 %v3941_v46, %v752_v38 }
 0x1c3   : > { %v793_v59 = vadd.f32 %v785_v55, %v785_v55  ;;  %v1016_v60 = vpack.c.b16 %v1015_v58, %v1015_v58  ;;  %2996 = vmatpush3.msra.mxu0 %v1170_v48  ;;  %v808_v8 = vpack.c.bf16 %v764_v14, %v3981_v20  ;;  %v1108_v20 = vunpack.c.l.s4 %v3609_v19 }
 0x1c4   : > { %v787_v21 = vadd.f32 %v779_v43, %v3869_v6  ;;  %v781_v61 = vmul.f32 %v3948_v50, %v766_v5  ;;  %2997 = vmatprep.subr.mxu0 %v1169_v57  ;;  %v809_v46 = vpack.c.bf16 %v766_v5, %v3986_v26  ;;  %v1168_v6 = vld [vmem:[%s4328_s15 + $0x48] sm:$0xff]  ;;  %v4072_v2 = vshrl.u32 %v1110_v23, 7 }
 0x1c5   : > { %801 = vst [vmem:[%s3976_s22 + $0x18] sm:$0xff] %v793_v59  ;;  %2984 = vmatmul.mubr.bf16.vlgmr.msra.gmra.mxu1 %v1016_v60  ;;  %2998 = vmatpush3.msra.mxu0 %v1169_v57  ;;  %v1109_v26 = vunpack.c.0.s8 %v1108_v20 }
 0x1c6   : > { %v795_v63 = vadd.f32 %v787_v21, %v787_v21  ;;  %v789_v15 = vadd.f32 %v781_v61, %v3872_v7  ;;  %2999 = vmatprep.subr.mxu0 %v1168_v6  ;;  %v1167_v7 = vld [vmem:[%s4328_s15 + $0x40] sm:$0xff]  ;;  %v4080_v37 = vsub.s32 0, %v4072_v2 }
 0x1c7   : > { %3000 = vmatpush3.msra.mxu0 %v1168_v6  ;;  %v1112_v28 = vsub.s32 %v1109_v26, %v4072_v2  ;;  %v1397_v21 = vld [vmem:[%s4329_s16] sm:$0xf] }
 0x1c8   : > { %803 = vst [vmem:[%s3976_s22 + $0x28] sm:$0xff] %v795_v63  ;;  %v797_v9 = vadd.f32 %v789_v15, %v789_v15  ;;  %3001 = vmatprep.subr.mxu0 %v1167_v7  ;;  %3031 = vmatprep.subr.msk.mxu1 %vm1422_vm4, %v1397_v21 }
 0x1c9   : > { %959 = vmatmul.mubr.bf16.gmra.mxu0 %v808_v8  ;;  %3032 = vmatpush3.msk.msra.mxu1 %vm1422_vm4, %v1397_v21 }
 0x1ca   : > { %968 = vmatprep.mubr.bf16.mxu0 %v3607_v62  ;;  %805 = vst [vmem:[%s3976_s22 + $0x38] sm:$0xff] %v797_v9  ;;  %3002 = vmatpush3.msra.mxu0 %v1167_v7 }
 0x1cb   : > { %3003 = vmatprep.subr.mxu0 %v1166_v11  ;;  %3045 = vmatprep.subr.bf16.mxu1 %v3606_v49 }
 0x1cc   : > { %3004 = vmatpush3.msra.mxu0 %v1166_v11 }
 0x1cd   : > { %3005 = vmatprep.subr.mxu0 %v1165_v12 }
 0x1ce   : > { %3006 = vmatpush3.msra.mxu0 %v1165_v12 }
 0x1cf   : > { %3007 = vmatprep.subr.mxu0 %v1164_v13 }
 0x1d0   : > { %3008 = vmatpush3.msra.mxu0 %v1164_v13 }
 0x1d1   : > { %969 = vmatmul.mubr.bf16.gmra.mxu0 %v809_v46  ;;  %3009 = vmatprep.subr.mxu0 %v1163_v22 }
 0x1d2   : > { %3010 = vmatpush3.msra.mxu0 %v1163_v22 }
 0x1d3   : > { %3011 = vmatprep.subr.mxu0 %v1162_v0 }
 0x1d4   : > { %3012 = vmatpush3.msra.mxu0 %v1162_v0 }
 0x1d5   : > { %3013 = vmatprep.subr.mxu0 %v1161_v29 }
 0x1d6   : > { %3014 = vmatpush3.msra.mxu0 %v1161_v29 }
 0x1d7   : > { %3015 = vmatprep.subr.mxu0 %v1160_v16 }
 0x1d8   : > { %3016 = vmatpush3.msra.mxu0 %v1160_v16 }
 0x1d9   : > { %3017 = vmatprep.subr.mxu0 %v1159_v17 }
 0x1da   : > { %3018 = vmatpush3.msra.mxu0 %v1159_v17 }
 0x279   : > { %v940_v18 = vpop.f32.mrf.mxu0 }
 0x27b   : > { %v4070_v24 = vpop.f32.mrf.mxu0 }
 0x27d   : > { %v944_v25 = vpop.f32.mrf.mxu0 }
 0x27f   : > { %v4074_v30 = vpop.f32.mrf.mxu0 }
 0x281   : > { %v950_v27 = vpop.f32.mrf.mxu0 }
 0x283   : > { %v4077_v31 = vpop.f32.mrf.mxu0 }
 0x285   : > { %v954_v1 = vpop.f32.mrf.mxu0  ;;  %v1100_v32 = vpop.f32.mrf.mxu1 }
 0x286   : > { %v1113_v33 = vrot.slane %v1100_v32, %v1112_v28 }
 0x287   : > { %v4082_v10 = vpop.f32.mrf.mxu0  ;;  %v2985_v34 = vpop.f32.mrf.mxu1 }
 0x288   : > { %v1114_v35 = vcombine.high %v1113_v33, %v1113_v33  ;;  %v1121_v36 = vrot.slane %v1113_v33, %v1112_v28 }
 0x289   : > { %v960_v39 = vpop.f32.mrf.mxu0  ;;  %v1103_v40 = vpop.f32.mrf.mxu1 }
 0x28a   : > { %v1128_v41 = vrot.slane %v1114_v35, %v1112_v28  ;;  %v1134_v42 = vrot.slane %v1121_v36, %v4080_v37  ;;  %v1129_v44 = vcombine.high %v1121_v36, %v1121_v36 }
 0x28b   : > { %v4085_v45 = vpop.f32.mrf.mxu0  ;;  %v2986_v47 = vpop.f32.mrf.mxu1 }
 0x28c   : > { %v1152_v48 = vmul.f32 %v1134_v42, %v944_v25  ;;  %v1151_v3 = vmul.f32 %v1134_v42, %v940_v18  ;;  %v1138_v51 = vrot.slane %v1128_v41, %v4080_v37  ;;  %v1142_v53 = vrot.slane %v1129_v44, %v4080_v37 }
 0x28d   : > { %v964_v52 = vpop.f32.mrf.mxu0  ;;  %v1130_v14 = vcombine.high %v1128_v41, %v1128_v41 }
 0x28e   : > { %3019 = vmatprep.mubr.f32.mxu0 %v1151_v3  ;;  %v1153_v4 = vmul.f32 %v1138_v51, %v950_v27  ;;  %v1154_v55 = vmul.f32 %v1138_v51, %v954_v1  ;;  %v1155_v56 = vmul.f32 %v1142_v53, %v960_v39  ;;  %v1156_v43 = vmul.f32 %v1142_v53, %v964_v52 }
 0x28f   : > { %v4089_v54 = vpop.f32.mrf.mxu0  ;;  %3020 = vmatmul.mubr.f32.vlgmr.msra.gmra.mxu0 %v1152_v48  ;;  %v1146_v58 = vrot.slane %v1130_v14, %v4080_v37 }
 0x290   : > { %3022 = vmatprep.mubr.f32.mxu0 %v1153_v4 }
 0x291   : > { %v970_v38 = vpop.f32.mrf.mxu0 }
 0x292   : > { %v1157_v5 = vmul.f32 %v1146_v58, %v970_v38 }
 0x293   : > { %v4091_v57 = vpop.f32.mrf.mxu0  ;;  %3023 = vmatmul.mubr.f32.gmra.mxu0 %v1154_v55 }
 0x294   : > { %3025 = vmatprep.mubr.f32.mxu0 %v1155_v56 }
 0x295   : > { %v974_v59 = vpop.f32.mrf.mxu0 }
 0x296   : > { %v1158_v60 = vmul.f32 %v1146_v58, %v974_v59 }
 0x297   : > { %3026 = vmatmul.mubr.f32.gmra.mxu0 %v1156_v43  ;;  %v4101_v61 = vpop.f32.mrf.mxu0 }
 0x298   : > { %3028 = vmatprep.mubr.f32.mxu0 %v1157_v5 }
 0x29b   : > { %3029 = vmatmul.mubr.f32.gmra.mxu0 %v1158_v60 }
 0x29c   : > { %2063 = vmatprep.mubr.bf16.mxu0 %v3607_v62 }
 0x34f   : > { %v3021_v63 = vpop.f32.mrf.mxu0 }
 0x350   : > { %v1281_v15 = vmul.f32 0.17677669, %v3021_v63 }
 0x351   : > { %v1241_v8 = vpop.f32.mrf.mxu0 }
 0x352   : > { %v1280_v9 = vmul.f32 0.17677669, %v1241_v8  ;;  %v1290_v6 = vsel %vm1288_vm5, %v1281_v15, -inf }
 0x353   : > { %v3024_v46 = vpop.f32.mrf.mxu0 }
 0x354   : > { %v1289_v7 = vsel %vm1288_vm5, %v1280_v9, -inf  ;;  %v1283_v11 = vmul.f32 0.17677669, %v3024_v46 }
 0x355   : > { %v1291_v12 = vmax.f32 %v1289_v7, %v1290_v6  ;;  %v1251_v13 = vpop.f32.mrf.mxu0 }
 0x356   : > { %v1282_v22 = vmul.f32 0.17677669, %v1251_v13  ;;  %v1299_v16 = vsel %vm1288_vm5, %v1283_v11, -inf }
 0x357   : > { %v1292_v0 = vrot.slane %v1291_v12, 4  ;;  %v3027_v29 = vpop.f32.mrf.mxu0 }
 0x358   : > { %v1298_v17 = vsel %vm1288_vm5, %v1282_v22, -inf  ;;  %v1285_v18 = vmul.f32 0.17677669, %v3027_v29 }
 0x359   : > { %v1293_v19 = vmax.f32 %v1291_v12, %v1292_v0  ;;  %v1300_v20 = vmax.f32 %v1298_v17, %v1299_v16  ;;  %v1261_v23 = vpop.f32.mrf.mxu0 }
 0x35a   : > { %v1284_v25 = vmul.f32 0.17677669, %v1261_v23  ;;  %v1308_v1 = vsel %vm1288_vm5, %v1285_v18, -inf }
 0x35b   : > { %v1294_v26 = vrot.slane %v1293_v19, 2  ;;  %v1301_v27 = vrot.slane %v1300_v20, 4  ;;  %v3030_v28 = vpop.f32.mrf.mxu0 }
 0x35c   : > { %v1307_v32 = vsel %vm1288_vm5, %v1284_v25, -inf  ;;  %v1287_v33 = vmul.f32 0.17677669, %v3030_v28 }
 0x35d   : > { %v1295_v34 = vmax.f32 %v1293_v19, %v1294_v26  ;;  %v1302_v35 = vmax.f32 %v1300_v20, %v1301_v27  ;;  %v1309_v36 = vmax.f32 %v1307_v32, %v1308_v1  ;;  %v1271_v39 = vpop.f32.mrf.mxu0 }
 0x35e   : > { %v1286_v40 = vmul.f32 0.17677669, %v1271_v39  ;;  %v1317_v47 = vsel %vm1288_vm5, %v1287_v33, -inf }
 0x35f   : > { %v1296_v41 = vrot.slane %v1295_v34, 1  ;;  %v1303_v42 = vrot.slane %v1302_v35, 2  ;;  %v1310_v44 = vrot.slane %v1309_v36, 4 }
 0x360   : > { %v1316_v48 = vsel %vm1288_vm5, %v1286_v40, -inf }
 0x361   : > { %v1297_v3 = vmax.f32 %v1295_v34, %v1296_v41  ;;  %v1304_v51 = vmax.f32 %v1302_v35, %v1303_v42  ;;  %v1311_v52 = vmax.f32 %v1309_v36, %v1310_v44  ;;  %v1318_v53 = vmax.f32 %v1316_v48, %v1317_v47 }
 0x363   : > { %v1325_v4 = vsub.f32 %v1280_v9, %v1297_v3  ;;  %v1326_v14 = vsub.f32 %v1281_v15, %v1297_v3  ;;  %v1305_v38 = vrot.slane %v1304_v51, 1  ;;  %v1312_v55 = vrot.slane %v1311_v52, 2 }
 0x364   : > { %v1319_v56 = vrot.slane %v1318_v53, 4 }
 0x365   : > { %v1333_v58 = vmul.f32 1.442695, %v1325_v4  ;;  %v1335_v43 = vmul.f32 1.442695, %v1326_v14  ;;  %v1306_v5 = vmax.f32 %v1304_v51, %v1305_v38  ;;  %v1313_v59 = vmax.f32 %v1311_v52, %v1312_v55 }
 0x366   : > { %v1320_v60 = vmax.f32 %v1318_v53, %v1319_v56 }
 0x367   : > { %3314 = vpow2.f32 %v1333_v58  ;;  %v1327_v21 = vsub.f32 %v1282_v22, %v1306_v5  ;;  %v1328_v63 = vsub.f32 %v1283_v11, %v1306_v5  ;;  %v1314_v8 = vrot.slane %v1313_v59, 1 }
 0x368   : > { %3316 = vpow2.f32 %v1335_v43  ;;  %v1321_v46 = vrot.slane %v1320_v60, 2 }
 0x369   : > { %v1337_v6 = vmul.f32 1.442695, %v1327_v21  ;;  %v1339_v7 = vmul.f32 1.442695, %v1328_v63  ;;  %v1315_v12 = vmax.f32 %v1313_v59, %v1314_v8 }
 0x36a   : > { %v1322_v13 = vmax.f32 %v1320_v60, %v1321_v46 }
 0x36b   : > { %3318 = vpow2.f32 %v1337_v6  ;;  %v1329_v15 = vsub.f32 %v1284_v25, %v1315_v12  ;;  %v1330_v9 = vsub.f32 %v1285_v18, %v1315_v12 }
 0x36c   : > { %3320 = vpow2.f32 %v1339_v7  ;;  %v1323_v0 = vrot.slane %v1322_v13, 1 }
 0x36d   : > { %v1341_v29 = vmul.f32 1.442695, %v1329_v15  ;;  %v1343_v16 = vmul.f32 1.442695, %v1330_v9 }
 0x36e   : > { %v1324_v17 = vmax.f32 %v1322_v13, %v1323_v0 }
 0x36f   : > { %3322 = vpow2.f32 %v1341_v29 }
 0x370   : > { %3324 = vpow2.f32 %v1343_v16  ;;  %v1331_v19 = vsub.f32 %v1286_v40, %v1324_v17  ;;  %v1332_v22 = vsub.f32 %v1287_v33, %v1324_v17 }
 0x372   : > { %v1345_v11 = vmul.f32 1.442695, %v1331_v19  ;;  %v1347_v20 = vmul.f32 1.442695, %v1332_v22 }
 0x374   : > { %v3315_v23 = vpop.eup %3314  ;;  %3326 = vpow2.f32 %v1345_v11 }
 0x375   : > { %v3317_v26 = vpop.eup %3316  ;;  %v1349_v27 = vsel %vm1288_vm5, %v3315_v23, 0.0  ;;  %3328 = vpow2.f32 %v1347_v20 }
 0x376   : > { %v1350_v25 = vsel %vm1288_vm5, %v3317_v26, 0.0 }
 0x377   : > { %v1351_v18 = vadd.f32 %v1350_v25, %v1349_v27 }
 0x378   : > { %v3319_v28 = vpop.eup %3318 }
 0x379   : > { %v3321_v1 = vpop.eup %3320  ;;  %v1352_v32 = vrot.slane %v1351_v18, 4  ;;  %v1358_v34 = vsel %vm1288_vm5, %v3319_v28, 0.0 }
 0x37a   : > { %v1359_v35 = vsel %vm1288_vm5, %v3321_v1, 0.0 }
 0x37b   : > { %v1353_v36 = vadd.f32 %v1352_v32, %v1351_v18  ;;  %v1360_v33 = vadd.f32 %v1359_v35, %v1358_v34  ;;  %v3212_v32 = vld [vmem:[#allocation8 + $0x28] sm:$0xff]   ;;  %v3213_v34 = vld [vmem:[#allocation8 + $0x20] sm:$0xff]   ;;  %v3214_v35 = vld [vmem:[#allocation8 + $0x18] sm:$0xff]  }
 0x37c   : > { %v3323_v39 = vpop.eup %3322 }
 0x37d   : > { %v3325_v40 = vpop.eup %3324  ;;  %v1354_v41 = vrot.slane %v1353_v36, 2  ;;  %v1361_v42 = vrot.slane %v1360_v33, 4  ;;  %v1367_v44 = vsel %vm1288_vm5, %v3323_v39, 0.0 }
 0x37e   : > { %v1368_v47 = vsel %vm1288_vm5, %v3325_v40, 0.0 }
 0x37f   : > { %v1355_v48 = vadd.f32 %v1354_v41, %v1353_v36  ;;  %v1362_v3 = vadd.f32 %v1361_v42, %v1360_v33  ;;  %v1369_v51 = vadd.f32 %v1368_v47, %v1367_v44  ;;  %v3215_v36 = vld [vmem:[#allocation8 + $0x10] sm:$0xff]   ;;  %v3216_v33 = vld [vmem:[#allocation8 + $0x8] sm:$0xff]  }
 0x381   : > { %v3327_v52 = vpop.eup %3326  ;;  %v1363_v53 = vrot.slane %v1362_v3, 2  ;;  %v1370_v4 = vrot.slane %v1369_v51, 4  ;;  %v1356_v14 = vrot.slane %v1355_v48, 1 }
 0x382   : > { %v3329_v38 = vpop.eup %3328  ;;  %v1376_v55 = vsel %vm1288_vm5, %v3327_v52, 0.0 }
 0x383   : > { %v1364_v56 = vadd.f32 %v1363_v53, %v1362_v3  ;;  %v1371_v58 = vadd.f32 %v1370_v4, %v1369_v51  ;;  %v1377_v43 = vsel %vm1288_vm5, %v3329_v38, 0.0  ;;  %v1357_v5 = vadd.f32 %v1356_v14, %v1355_v48 }
 0x384   : > { %v1378_v59 = vadd.f32 %v1377_v43, %v1376_v55 }
 0x385   : > { %v1372_v60 = vrot.slane %v1371_v58, 2  ;;  %3330 = vrcp.f32 %v1357_v5  ;;  %v1365_v21 = vrot.slane %v1364_v56, 1 }
 0x386   : > { %v1379_v63 = vrot.slane %v1378_v59, 4 }
 0x387   : > { %v1373_v8 = vadd.f32 %v1372_v60, %v1371_v58  ;;  %v1366_v46 = vadd.f32 %v1365_v21, %v1364_v56 }
 0x388   : > { %v1380_v6 = vadd.f32 %v1379_v63, %v1378_v59 }
 0x389   : > { %3332 = vrcp.f32 %v1366_v46  ;;  %v1374_v7 = vrot.slane %v1373_v8, 1 }
 0x38a   : > { %v1381_v12 = vrot.slane %v1380_v6, 2 }
 0x38b   : > { %v1375_v13 = vadd.f32 %v1374_v7, %v1373_v8 }
 0x38c   : > { %v1382_v15 = vadd.f32 %v1381_v12, %v1380_v6 }
 0x38d   : > { %3334 = vrcp.f32 %v1375_v13 }
 0x38e   : > { %v1383_v9 = vrot.slane %v1382_v15, 1 }
 0x390   : > { %v1384_v0 = vadd.f32 %v1383_v9, %v1382_v15 }
 0x392   : > { %v3331_v29 = vpop.eup %3330  ;;  %3336 = vrcp.f32 %v1384_v0 }
 0x393   : > { %v1389_v16 = vmul.f32 %v3331_v29, %v3315_v23  ;;  %v1390_v17 = vmul.f32 %v3331_v29, %v3317_v26 }
 0x395   : > { %3033 = vmatprep.mubr.msk.f32.mxu1 %vm1288_vm5, %v1389_v16 }
 0x396   : > { %v3333_v19 = vpop.eup %3332  ;;  %3034 = vmatmul.mubr.msk.f32.vlgmr.msra.gmra.mxu1 %vm1288_vm5, %v1390_v17 }
 0x397   : > { %v1391_v22 = vmul.f32 %v3333_v19, %v3319_v28  ;;  %v1392_v11 = vmul.f32 %v3333_v19, %v3321_v1  ;;  %v3210_v28 = vld [vmem:[#allocation8 + $0x38] sm:$0xff]   ;;  %v3211_v1 = vld [vmem:[#allocation8 + $0x30] sm:$0xff]  }
 0x398   : > { %3046 = vmatpush3.bf16.msra.mxu1 %v3210_v28 }
 0x399   : > { %3036 = vmatprep.mubr.msk.f32.mxu1 %vm1288_vm5, %v1391_v22  ;;  %3047 = vmatprep.subr.bf16.mxu1 %v3606_v49 }
 0x39a   : > { %v3335_v20 = vpop.eup %3334  ;;  %3037 = vmatmul.mubr.msk.f32.gmra.mxu1 %vm1288_vm5, %v1392_v11 }
 0x39b   : > { %v1393_v27 = vmul.f32 %v3335_v20, %v3323_v39  ;;  %v1394_v25 = vmul.f32 %v3335_v20, %v3325_v40  ;;  %v3217_v39 = vld [vmem:[#allocation8] sm:$0xff]  }
 0x39c   : > { %3048 = vmatpush3.bf16.msra.mxu1 %v3211_v1 }
 0x39d   : > { %3039 = vmatprep.mubr.msk.f32.mxu1 %vm1288_vm5, %v1393_v27  ;;  %3049 = vmatprep.subr.bf16.mxu1 %v3606_v49 }
 0x39e   : > { %3040 = vmatmul.mubr.msk.f32.gmra.mxu1 %vm1288_vm5, %v1394_v25 }
 0x39f   : > { %v3337_v23 = vpop.eup %3336 }
 0x3a0   : > { %v1395_v26 = vmul.f32 %v3337_v23, %v3327_v52  ;;  %v1396_v18 = vmul.f32 %v3337_v23, %v3329_v38  ;;  %3050 = vmatpush3.bf16.msra.mxu1 %v3212_v32 }
 0x3a1   : > { %3051 = vmatprep.subr.bf16.mxu1 %v3606_v49 }
 0x3a2   : > { %3042 = vmatprep.mubr.msk.f32.mxu1 %vm1288_vm5, %v1395_v26 }
 0x3a3   : > { %3043 = vmatmul.mubr.msk.f32.gmra.mxu1 %vm1288_vm5, %v1396_v18 }
 0x3a4   : > { %3061 = vmatprep.mubr.msk.bf16.mxu1 %vm3608_vm0, %v3606_v49  ;;  %3052 = vmatpush3.bf16.msra.mxu1 %v3213_v34 }
 0x3a5   : > { %3053 = vmatprep.subr.bf16.mxu1 %v3606_v49 }
 0x3a8   : > { %3054 = vmatpush3.bf16.msra.mxu1 %v3214_v35  ;;  %v2785_v35 = vld [vmem:[%s4319_s6] ss:$0 sm:$0xff] }
 0x3a9   : > { %3055 = vmatprep.subr.bf16.mxu1 %v3606_v49 }
 0x3ac   : > { %3056 = vmatpush3.bf16.msra.mxu1 %v3215_v36 }
 0x3ad   : > { %3057 = vmatprep.subr.bf16.mxu1 %v3606_v49 }
 0x3b0   : > { %3058 = vmatpush3.bf16.msra.mxu1 %v3216_v33 }
 0x3b1   : > { %3059 = vmatprep.subr.bf16.mxu1 %v3606_v49 }
 0x3b4   : > { %3060 = vmatpush3.bf16.msra.mxu1 %v3217_v39 }
 0x456   : > { %v3035_v40 = vpop.f32.mrf.mxu1 }
 0x457   : > { %v1532_v42 = vmul.f32 %v3035_v40, %v4074_v30 }
 0x458   : > { %v1492_v41 = vpop.f32.mrf.mxu1 }
 0x459   : > { %v1531_v44 = vmul.f32 %v1492_v41, %v4070_v24 }
 0x45a   : > { %v3038_v47 = vpop.f32.mrf.mxu1 }
 0x45b   : > { %v1539_v48 = vadd.f32 %v1532_v42, %v1531_v44  ;;  %v1534_v52 = vmul.f32 %v3038_v47, %v4082_v10 }
 0x45c   : > { %v1502_v3 = vpop.f32.mrf.mxu1 }
 0x45d   : > { %v1540_v51 = vrot.slane %v1539_v48, 4  ;;  %v1533_v53 = vmul.f32 %v1502_v3, %v4077_v31  ;;  %v3356_v3 = vld [vmem:[%s3844_s18 + $0x10] sm:$0xff] }
 0x45e   : > { %v3041_v4 = vpop.f32.mrf.mxu1 }
 0x45f   : > { %v1541_v14 = vadd.f32 %v1540_v51, %v1539_v48  ;;  %v1546_v38 = vadd.f32 %v1534_v52, %v1533_v53  ;;  %v1536_v56 = vmul.f32 %v3041_v4, %v4089_v54  ;;  %v3357_v52 = vld [vmem:[%s3844_s18 + $0x20] sm:$0xff] }
 0x460   : > { %v1512_v49 = vpop.f32.mrf.mxu1 }
 0x461   : > { %v1547_v55 = vrot.slane %v1546_v38, 4  ;;  %v1535_v58 = vmul.f32 %v1512_v49, %v4085_v45  ;;  %v1542_v30 = vrot.slane %v1541_v14, 2 }
 0x463   : > { %v1548_v43 = vadd.f32 %v1547_v55, %v1546_v38  ;;  %v1553_v24 = vadd.f32 %v1536_v56, %v1535_v58  ;;  %v3044_v5 = vpop.f32.mrf.mxu1  ;;  %v1543_v63 = vadd.f32 %v1542_v30, %v1541_v14  ;;  %v3359_v14 = vld [vmem:[%s3844_s18] sm:$0xff] }
 0x464   : > { %v1538_v10 = vmul.f32 %v3044_v5, %v4101_v61 }
 0x465   : > { %v1549_v59 = vrot.slane %v1548_v43, 2  ;;  %v1554_v60 = vrot.slane %v1553_v24, 4  ;;  %v1522_v21 = vpop.f32.mrf.mxu1  ;;  %v1544_v54 = vrot.slane %v1543_v63, 1 }
 0x466   : > { %v1537_v31 = vmul.f32 %v1522_v21, %v4091_v57 }
 0x467   : > { %v1550_v8 = vadd.f32 %v1549_v59, %v1548_v43  ;;  %v1555_v46 = vadd.f32 %v1554_v60, %v1553_v24  ;;  %v1545_v29 = vadd.f32 %v1544_v54, %v1543_v63 }
 0x468   : > { %v1560_v6 = vadd.f32 %v1538_v10, %v1537_v31 }
 0x469   : > { %v1551_v7 = vrot.slane %v1550_v8, 1  ;;  %v1556_v12 = vrot.slane %v1555_v46, 2  ;;  %v1567_v61 = vpack.c.bf16 %v1545_v29, %v1545_v29 }
 0x46a   : > { %v1561_v13 = vrot.slane %v1560_v6, 4 }
 0x46b   : > { %v1557_v45 = vadd.f32 %v1556_v12, %v1555_v46  ;;  %v1552_v15 = vadd.f32 %v1551_v7, %v1550_v8  ;;  %v1598_v23 = vunpack.c.l.b16 %v1567_v61  ;;  %v3229_v61 = vld [vmem:[#allocation10 + $0xcc] ss:$16 sps:$4 sm:$0xff]  }
 0x46c   : > { %v1562_v9 = vadd.f32 %v1561_v13, %v1560_v6 }
 0x46d   : > { %v1558_v0 = vrot.slane %v1557_v45, 1  ;;  %v1568_v19 = vpack.c.bf16 %v1552_v15, %v1552_v15 }
 0x46e   : > { %v1563_v16 = vrot.slane %v1562_v9, 2 }
 0x46f   : > { %v1559_v17 = vadd.f32 %v1558_v0, %v1557_v45  ;;  %v1599_v57 = vunpack.c.l.b16 %v1568_v19  ;;  %v3221_v19 = vld [vmem:[#allocation10 + $0xe8] ss:$16 sps:$4 sm:$0xff]  }
 0x470   : > { %v1564_v22 = vadd.f32 %v1563_v16, %v1562_v9  ;;  %v3218_v16 = vld [vmem:[#allocation10 + $0xe0] ss:$16 sps:$4 sm:$0xff]  }
 0x471   : > { %v1569_v11 = vpack.c.bf16 %v1559_v17, %v1559_v17  ;;  %v1602_v18 = vsel %vm1008_vm1, %v1599_v57, %v1598_v23  ;;  %v3220_v17 = vld [vmem:[#allocation10 + $0xe4] ss:$16 sps:$4 sm:$0xff]   ;;  %v3227_v57 = vld [vmem:[#allocation10 + $0xc8] ss:$16 sps:$4 sm:$0xff]   ;;  %v3230_v23 = vld [vmem:[#allocation10 + $0xa0] ss:$16 sps:$4 sm:$0xff]  }
 0x472   : > { %v1565_v20 = vrot.slane %v1564_v22, 1  ;;  %2031 = vmatprep.subr.bf16.mxu0 %v3220_v17 }
 0x473   : > { %v1600_v25 = vunpack.c.l.b16 %v1569_v11  ;;  %v3226_v11 = vld [vmem:[#allocation10 + $0xc4] ss:$16 sps:$4 sm:$0xff]   ;;  %2032 = vmatpush1.bf16.msra.mxu0 %v3218_v16 }
 0x474   : > { %v1566_v27 = vadd.f32 %v1565_v20, %v1564_v22  ;;  %v3223_v22 = vld [vmem:[#allocation10 + $0xec] ss:$16 sps:$4 sm:$0xff]   ;;  %v3224_v20 = vld [vmem:[#allocation10 + $0xc0] ss:$16 sps:$4 sm:$0xff]   ;;  %2033 = vmatprep.subr.bf16.mxu0 %v3226_v11 }
 0x475   : > { %v1603_v1 = vsel %vm1011_vm2, %v1600_v25, %v1602_v18  ;;  %2072 = vmatprep.subr.bf16.mxu1 %v3223_v22  ;;  %v3235_v25 = vld [vmem:[#allocation10 + $0xac] ss:$16 sps:$4 sm:$0xff]   ;;  %v3238_v18 = vld [vmem:[#allocation10 + $0x84] ss:$16 sps:$4 sm:$0xff]  }
 0x476   : > { %v1570_v26 = vpack.c.bf16 %v1566_v27, %v1566_v27  ;;  %v3232_v27 = vld [vmem:[#allocation10 + $0xa4] ss:$16 sps:$4 sm:$0xff]  }
 0x477   : > { %2034 = vmatpush1.bf16.msra.mxu0 %v3224_v20  ;;  %v3266_v20 = vld [vmem:[#allocation11 + $0x78] sm:$0xff]  }
 0x478   : > { %v1601_v28 = vunpack.c.l.b16 %v1570_v26  ;;  %2035 = vmatprep.subr.bf16.mxu0 %v3232_v27  ;;  %v3233_v26 = vld [vmem:[#allocation10 + $0xa8] ss:$16 sps:$4 sm:$0xff]  }
 0x479   : > { %v3268_v27 = vld [vmem:[#allocation11 + $0x38] sm:$0xff]  }
 0x47a   : > { %v1604_v32 = vsel %vm1014_vm3, %v1601_v28, %v1603_v1  ;;  %v3241_v28 = vld [vmem:[#allocation10 + $0x8c] ss:$16 sps:$4 sm:$0xff]   ;;  %v3236_v1 = vld [vmem:[#allocation10 + $0x80] ss:$16 sps:$4 sm:$0xff]  }
 0x47b   : > { %v1605_v34 = vpack.c.b16 %v1604_v32, %v1604_v32  ;;  %2036 = vmatpush1.bf16.msra.mxu0 %v3230_v23  ;;  %v3239_v32 = vld [vmem:[#allocation10 + $0x88] ss:$16 sps:$4 sm:$0xff]   ;;  %v3270_v23 = vld [vmem:[#allocation11 + $0x70] sm:$0xff]  }
 0x47c   : > { %2037 = vmatprep.subr.bf16.mxu0 %v3238_v18  ;;  %v3272_v18 = vld [vmem:[#allocation11 + $0x30] sm:$0xff]  }
 0x47d   : > { %3062 = vmatmul.mubr.bf16.vlgmr.msra.gmra.mxu1 %v1605_v34  ;;  %v3244_v34 = vld [vmem:[#allocation10 + $0x64] ss:$16 sps:$4 sm:$0xff]  }
 0x47e   : > { %2104 = vmatprep.mubr.bf16.mxu1 %v3607_v62  ;;  %v3358_v62 = vld [vmem:[%s3844_s18 + $0x30] sm:$0xff]  ;;  %2073 = vmatpush1.bf16.msra.mxu1 %v3221_v19  ;;  %s2607_s18 = sshll.u32 %s3976_s22, 4  ;;  %s4262_s18 = int_to_ptr.vmem [resolvable:$true] %s2607_s18 }
 0x47f   : > { %2074 = vmatprep.subr.bf16.mxu1 %v3229_v61  ;;  %2038 = vmatpush1.bf16.msra.mxu0 %v3236_v1  ;;  %v3274_v1 = vld [vmem:[#allocation11 + $0x68] sm:$0xff]   ;;  %s3516_s0 = scalar_lea.vmem %s4262_s18, 1024  ;;  %p3523_p6 = scmp.lt.s32.totalorder %s4262_s18, %s3521_s29 }
 0x480   : > { %2039 = vmatprep.subr.bf16.mxu0 %v3244_v34  ;;  %v3276_v34 = vld [vmem:[#allocation11 + $0x28] sm:$0xff]   ;;  %p3517_p1 = scmp.ne.s32.totalorder %s4262_s18, %s3516_s0  ;;  %p3524_p13 = scmp.lt.s32.totalorder %s3522_s17, %s3516_s0 }
 0x482   : > { %2075 = vmatpush1.bf16.msra.mxu1 %v3227_v57  ;;  %v3267_v57 = vld [vmem:[#allocation11 + $0xf8] sm:$0xff]   ;;  %p3518_p2 = pnand %p3517_p1, %p3742_p5  ;;  %p3525_p9 = por %p3524_p13, %p3523_p6 }
 0x483   : > { %2076 = vmatprep.subr.bf16.mxu1 %v3235_v25  ;;  %v3269_v25 = vld [vmem:[#allocation11 + $0xb8] sm:$0xff]  }
 0x484   : > { %p3519_p4 = pneg %p3518_p2 }
 0x486   : > { %2077 = vmatpush1.bf16.msra.mxu1 %v3233_v26  ;;  %v3271_v26 = vld [vmem:[#allocation11 + $0xf0] sm:$0xff]   ;;  %p3526_p7 = pnand %p3525_p9, %p3519_p4 }
 0x487   : > { %2078 = vmatprep.subr.bf16.mxu1 %v3241_v28  ;;  %v3273_v28 = vld [vmem:[#allocation11 + $0xb0] sm:$0xff]  }
 0x48a   : > { %2079 = vmatpush1.bf16.msra.mxu1 %v3239_v32  ;;  %v3275_v32 = vld [vmem:[#allocation11 + $0xe8] sm:$0xff]  }
 0x53d   : > { %v1689_v36 = vpop.f32.mrf.mxu1 }
 0x53e   : > { %v1690_v33 = vadd.f32 %v2785_v35, %v1689_v36  ;;  %v3247_v35 = vld [vmem:[#allocation10 + $0x6c] ss:$16 sps:$4 sm:$0xff]   ;;  %v3242_v36 = vld [vmem:[#allocation10 + $0x60] ss:$16 sps:$4 sm:$0xff]  }
 0x53f   : > { %v3063_v39 = vpop.f32.mrf.mxu1  ;;  %2080 = vmatprep.subr.bf16.mxu1 %v3247_v35  ;;  %2040 = vmatpush1.bf16.msra.mxu0 %v3242_v36  ;;  %v3277_v35 = vld [vmem:[#allocation11 + $0xa8] sm:$0xff]   ;;  %v3278_v36 = vld [vmem:[#allocation11 + $0x60] sm:$0xff]  }
 0x540   : > { %v1702_v40 = vmul.f32 %v3948_v50, %v1690_v33  ;;  %v3245_v33 = vld [vmem:[#allocation10 + $0x68] ss:$16 sps:$4 sm:$0xff]   ;;  %v3250_v39 = vld [vmem:[#allocation10 + $0x44] ss:$16 sps:$4 sm:$0xff]  }
 0x541   : > { %v1692_v41 = vpop.f32.mrf.mxu1  ;;  %2081 = vmatpush1.bf16.msra.mxu1 %v3245_v33  ;;  %2041 = vmatprep.subr.bf16.mxu0 %v3250_v39  ;;  %v3279_v33 = vld [vmem:[#allocation11 + $0xe0] sm:$0xff]  }
 0x542   : > { %v1704_v42 = vrot.slane %v1702_v40, 1  ;;  %v1705_v44 = vrot.slane %v1702_v40, 2  ;;  %v1706_v47 = vrot.slane %v1702_v40, 3  ;;  %v1711_v38 = vadd.f32 %v3359_v14, %v1702_v40  ;;  %v3253_v40 = vld [vmem:[#allocation10 + $0x4c] ss:$16 sps:$4 sm:$0xff]   ;;  %v3280_v39 = vld [vmem:[#allocation11 + $0x20] sm:$0xff]  }
 0x543   : > { %v3064_v48 = vpop.f32.mrf.mxu1  ;;  %v3248_v41 = vld [vmem:[#allocation10 + $0x40] ss:$16 sps:$4 sm:$0xff]   ;;  %2082 = vmatprep.subr.bf16.mxu1 %v3253_v40 }
 0x544   : > { %v1712_v51 = vadd.f32 %v3356_v3, %v1704_v42  ;;  %v1713_v53 = vadd.f32 %v3357_v52, %v1705_v44  ;;  %v1714_v4 = vadd.f32 %v3358_v62, %v1706_v47  ;;  %v3251_v42 = vld [vmem:[#allocation10 + $0x48] ss:$16 sps:$4 sm:$0xff]   ;;  %v3256_v44 = vld [vmem:[#allocation10 + $0x24] ss:$16 sps:$4 sm:$0xff]   ;;  %v3259_v47 = vld [vmem:[#allocation10 + $0x2c] ss:$16 sps:$4 sm:$0xff]   ;;  %2042 = vmatpush1.bf16.msra.mxu0 %v3248_v41 }
 0x545   : > { %v3254_v48 = vld [vmem:[#allocation10 + $0x20] ss:$16 sps:$4 sm:$0xff]   ;;  %2083 = vmatpush1.bf16.msra.mxu1 %v3251_v42  ;;  %2043 = vmatprep.subr.bf16.mxu0 %v3256_v44  ;;  %v3257_v3 = vld [vmem:[#allocation10 + $0x28] ss:$16 sps:$4 sm:$0xff]   ;;  %v3265_v52 = vld [vmem:[#allocation10 + $0xc] ss:$16 sps:$4 sm:$0xff]  }
 0x546   : > { %v1721_v49 = vrot.slane %v1712_v51, 7  ;;  %v1723_v55 = vrot.slane %v1713_v53, 6  ;;  %v1725_v58 = vrot.slane %v1714_v4, 5  ;;  %2084 = vmatprep.subr.bf16.mxu1 %v3259_v47  ;;  %v3263_v62 = vld [vmem:[#allocation10 + $0x8] ss:$16 sps:$4 sm:$0xff]   ;;  %v3281_v40 = vld [vmem:[#allocation11 + $0xa0] sm:$0xff]  }
 0x547   : > { %v3282_v41 = vld [vmem:[#allocation11 + $0x58] sm:$0xff]  }
 0x548   : > { %v1722_v56 = vsel %vm1008_vm1, %v1721_v49, %v1711_v38  ;;  %2044 = vmatpush1.bf16.msra.mxu0 %v3254_v48  ;;  %v3283_v42 = vld [vmem:[#allocation11 + $0xd8] sm:$0xff]   ;;  %v3286_v48 = vld [vmem:[#allocation11 + $0x50] sm:$0xff]  }
 0x549   : > { %v1724_v50 = vsel %vm1011_vm2, %v1723_v55, %v1722_v56  ;;  %2085 = vmatpush1.bf16.msra.mxu1 %v3257_v3  ;;  %v2795_v55 = vld [vmem:[%s4321_s8] ss:$0 sm:$0xff]  ;;  %v3287_v3 = vld [vmem:[#allocation11 + $0xd0] sm:$0xff]  }
 0x54a   : > { %v1726_v30 = vsel %vm1014_vm3, %v1725_v58, %v1724_v50  ;;  %2086 = vmatprep.subr.bf16.mxu1 %v3265_v52  ;;  %v3284_v44 = vld [vmem:[#allocation11 + $0x18] sm:$0xff]   ;;  %v3289_v52 = vld [vmem:[#allocation11 + $0x90] sm:$0xff]  }
 0x54b   : > { %v1728_v43 = vsel %vm1422_vm4, %v1726_v30, 0.0  ;;  %v3285_v47 = vld [vmem:[#allocation11 + $0x98] sm:$0xff]  }
 0x54c   : > { %1729 = vadd.xlane.f32.xlu0 %v1728_v43  ;;  %v2796_v43 = vld [vmem:[%s4322_s9] ss:$0 sm:$0xff] }
 0x54d   : > { %2087 = vmatpush1.bf16.msra.mxu1 %v3263_v62  ;;  %v3291_v62 = vld [vmem:[#allocation11 + $0xc8] sm:$0xff]  }
 0x54e   : > { %2945 = vmatprep.subr.bf16.mxu1 %v3267_v57 }
 0x5d5   : > { %v1730_v24 = vpop.xlane.xlu0 %1729 }
 0x5d6   : > { %v1731_v5 = vmul.f32 0.0078125, %v1730_v24 }
 0x5d8   : > { %v1733_v59 = vrot.slane %v1731_v5, 1  ;;  %v1734_v60 = vrot.slane %v1731_v5, 2  ;;  %v1735_v21 = vrot.slane %v1731_v5, 3  ;;  %v4160_v63 = vsub.f32 %v1711_v38, %v1731_v5 }
 0x5da   : > { %v4162_v10 = vsub.f32 %v1712_v51, %v1733_v59  ;;  %v4164_v31 = vsub.f32 %v1713_v53, %v1734_v60  ;;  %v4166_v8 = vsub.f32 %v1714_v4, %v1735_v21  ;;  %v1744_v12 = vmul.f32 %v4160_v63, %v4160_v63  ;;  %v3262_v51 = vld [vmem:[#allocation10 + $0x4] ss:$16 sps:$4 sm:$0xff]   ;;  %v3260_v53 = vld [vmem:[#allocation10] ss:$16 sps:$4 sm:$0xff]  }
 0x5db   : > { %2045 = vmatprep.subr.bf16.mxu0 %v3262_v51  ;;  %v3288_v51 = vld [vmem:[#allocation11 + $0x10] sm:$0xff]  }
 0x5dc   : > { %v1745_v46 = vmul.f32 %v4162_v10, %v4162_v10  ;;  %v1746_v6 = vmul.f32 %v4164_v31, %v4164_v31  ;;  %v1747_v7 = vmul.f32 %v4166_v8, %v4166_v8  ;;  %2046 = vmatpush1.bf16.msra.mxu0 %v3260_v53  ;;  %v3290_v53 = vld [vmem:[#allocation11 + $0x48] sm:$0xff]  }
 0x5dd   : > { %2923 = vmatprep.subr.bf16.mxu0 %v3266_v20 }
 0x5de   : > { %v1752_v54 = vrot.slane %v1745_v46, 7  ;;  %v1754_v13 = vrot.slane %v1746_v6, 6  ;;  %v1756_v15 = vrot.slane %v1747_v7, 5 }
 0x5e0   : > { %v1753_v45 = vsel %vm1008_vm1, %v1752_v54, %v1744_v12 }
 0x5e1   : > { %v1755_v9 = vsel %vm1011_vm2, %v1754_v13, %v1753_v45 }
 0x5e2   : > { %v1757_v0 = vsel %vm1014_vm3, %v1756_v15, %v1755_v9 }
 0x5e3   : > { %v1759_v29 = vsel %vm1422_vm4, %v1757_v0, 0.0 }
 0x5e4   : > { %1760 = vadd.xlane.f32.xlu1 %v1759_v29 }
 0x66d   : > { %v1761_v4 = vpop.xlane.xlu1 %1760 }
 0x66e   : > { %v1762_v14 = vmul.f32 0.0078125, %v1761_v4  ;;  %v3292_v4 = vld [vmem:[#allocation11 + $0x8] sm:$0xff]  }
 0x670   : > { %v1763_v38 = vadd.f32 1e-05, %v1762_v14  ;;  %v3293_v14 = vld [vmem:[#allocation11 + $0x88] sm:$0xff]  }
 0x672   : > { %3338 = vrsqrt.f32 %v1763_v38  ;;  %v3294_v38 = vld [vmem:[#allocation11 + $0x40] sm:$0xff]  }
 0x67f   : > { %v3339_v49 = vpop.eup %3338 }
 0x680   : > { %v1766_v56 = vrot.slane %v3339_v49, 1  ;;  %v1767_v58 = vrot.slane %v3339_v49, 2  ;;  %v1768_v50 = vrot.slane %v3339_v49, 3  ;;  %v1773_v30 = vmul.f32 %v3339_v49, %v4160_v63  ;;  %v3295_v49 = vld [vmem:[#allocation11 + $0xc0] sm:$0xff]  }
 0x682   : > { %v1774_v24 = vmul.f32 %v1766_v56, %v4162_v10  ;;  %v1775_v5 = vmul.f32 %v1767_v58, %v4164_v31  ;;  %v1776_v59 = vmul.f32 %v1768_v50, %v4166_v8  ;;  %v1783_v60 = vmul.f32 %v2795_v55, %v1773_v30  ;;  %v3297_v56 = vld [vmem:[#allocation11 + $0x80] sm:$0xff]  }
 0x683   : > { %v1845_v58 = vsub.s32 2, %v4072_v2  ;;  %v1833_v50 = vld [vmem:[%s4324_s11] sm:$0xf]  ;;  %v1841_v30 = vsub.s32 1, %v4072_v2 }
 0x684   : > { %v1784_v21 = vmul.f32 %v2795_v55, %v1774_v24  ;;  %v1785_v46 = vmul.f32 %v2795_v55, %v1775_v5  ;;  %v1786_v6 = vmul.f32 %v2795_v55, %v1776_v59  ;;  %v4190_v7 = vadd.f32 %v2796_v43, %v1783_v60  ;;  %v3296_v55 = vld [vmem:[#allocation11] sm:$0xff]  }
 0x685   : > { %v1838_v24 = vrot.slane %v1833_v50, %v4080_v37  ;;  %v1846_v5 = vrot.slane %v1833_v50, %v1845_v58 }
 0x686   : > { %v4192_v12 = vadd.f32 %v2796_v43, %v1784_v21  ;;  %v4194_v54 = vadd.f32 %v2796_v43, %v1785_v46  ;;  %v4196_v63 = vadd.f32 %v2796_v43, %v1786_v6  ;;  %v1797_v13 = vpack.c.bf16 %v4190_v7, %v4190_v7 }
 0x687   : > { %v1849_v43 = vsub.s32 3, %v4072_v2  ;;  %v1842_v21 = vrot.slane %v1833_v50, %v1841_v30 }
 0x688   : > { %v1798_v10 = vpack.c.bf16 %v4192_v12, %v4192_v12  ;;  %v1799_v31 = vpack.c.bf16 %v4194_v54, %v4194_v54  ;;  %v1800_v8 = vpack.c.bf16 %v4196_v63, %v4196_v63  ;;  %v1859_v0 = vunpack.c.l.b16 %v1797_v13 }
 0x689   : > { %v1850_v46 = vrot.slane %v1833_v50, %v1849_v43 }
 0x68a   : > { %v1860_v45 = vunpack.c.l.b16 %v1798_v10  ;;  %v1861_v15 = vunpack.c.l.b16 %v1799_v31  ;;  %v1862_v9 = vunpack.c.l.b16 %v1800_v8 }
 0x68c   : > { %v1863_v29 = vrot.slane %v1860_v45, 7  ;;  %v1865_v16 = vrot.slane %v1861_v15, 6  ;;  %v1867_v19 = vrot.slane %v1862_v9, 5 }
 0x68e   : > { %v1864_v17 = vsel %vm1008_vm1, %v1863_v29, %v1859_v0 }
 0x68f   : > { %v1866_v22 = vsel %vm1011_vm2, %v1865_v16, %v1864_v17 }
 0x690   : > { %v1868_v11 = vsel %vm1014_vm3, %v1867_v19, %v1866_v22 }
 0x691   : > { %v1869_v61 = vpack.c.b16 %v1868_v11, %v1868_v11 }
 0x693   : > { %2064 = vmatmul.mubr.bf16.vlgmr.msra.gmra.mxu0 %v1869_v61  ;;  %2105 = vmatmul.mubr.bf16.vlgmr.msra.gmra.mxu1 %v1869_v61 }
 0x694   : > { %2924 = vmatpush3.bf16.msra.mxu0 %v3268_v27  ;;  %2946 = vmatpush3.bf16.msra.mxu1 %v3269_v25 }
 0x695   : > { %2925 = vmatprep.subr.bf16.mxu0 %v3270_v23  ;;  %2947 = vmatprep.subr.bf16.mxu1 %v3271_v26 }
 0x698   : > { %2926 = vmatpush3.bf16.msra.mxu0 %v3272_v18  ;;  %2948 = vmatpush3.bf16.msra.mxu1 %v3273_v28 }
 0x699   : > { %2927 = vmatprep.subr.bf16.mxu0 %v3274_v1  ;;  %2949 = vmatprep.subr.bf16.mxu1 %v3275_v32 }
 0x69c   : > { %2928 = vmatpush3.bf16.msra.mxu0 %v3276_v34  ;;  %2950 = vmatpush3.bf16.msra.mxu1 %v3277_v35 }
 0x69d   : > { %2929 = vmatprep.subr.bf16.mxu0 %v3278_v36  ;;  %2951 = vmatprep.subr.bf16.mxu1 %v3279_v33 }
 0x6a0   : > { %2930 = vmatpush3.bf16.msra.mxu0 %v3280_v39  ;;  %2952 = vmatpush3.bf16.msra.mxu1 %v3281_v40 }
 0x6a1   : > { %2931 = vmatprep.subr.bf16.mxu0 %v3282_v41  ;;  %2953 = vmatprep.subr.bf16.mxu1 %v3283_v42 }
 0x6a4   : > { %2932 = vmatpush3.bf16.msra.mxu0 %v3284_v44  ;;  %2954 = vmatpush3.bf16.msra.mxu1 %v3285_v47 }
 0x6a5   : > { %2933 = vmatprep.subr.bf16.mxu0 %v3286_v48  ;;  %2955 = vmatprep.subr.bf16.mxu1 %v3287_v3 }
 0x6a8   : > { %2934 = vmatpush3.bf16.msra.mxu0 %v3288_v51  ;;  %2956 = vmatpush3.bf16.msra.mxu1 %v3289_v52 }
 0x6a9   : > { %2935 = vmatprep.subr.bf16.mxu0 %v3290_v53  ;;  %2957 = vmatprep.subr.bf16.mxu1 %v3291_v62 }
 0x6ac   : > { %2936 = vmatpush3.bf16.msra.mxu0 %v3292_v4  ;;  %2958 = vmatpush3.bf16.msra.mxu1 %v3293_v14 }
 0x6ad   : > { %2937 = vmatprep.subr.bf16.mxu0 %v3294_v38  ;;  %2959 = vmatprep.subr.bf16.mxu1 %v3295_v49 }
 0x6b0   : > { %2938 = vmatpush3.bf16.msra.mxu0 %v3296_v55  ;;  %2960 = vmatpush3.bf16.msra.mxu1 %v3297_v56 }
 0x753   : > { %v2065_v59 = vpop.f32.mrf.mxu0  ;;  %v2106_v60 = vpop.f32.mrf.mxu1 }
 0x754   : > { %v4216_v6 = vadd.f32 %v2065_v59, %v1838_v24  ;;  %v4218_v13 = vadd.f32 %v2106_v60, %v1846_v5 }
 0x755   : > { %v2067_v10 = vpop.f32.mrf.mxu0  ;;  %v2108_v31 = vpop.f32.mrf.mxu1 }
 0x756   : > { %v4221_v8 = vmul.f32 0.70710677, %v4216_v6  ;;  %v4224_v45 = vmul.f32 0.70710677, %v4218_v13  ;;  %v4226_v2 = vadd.f32 %v2067_v10, %v1842_v21  ;;  %v4228_v37 = vadd.f32 %v2108_v31, %v1850_v46 }
 0x757   : > { %v2069_v15 = vpop.f32.mrf.mxu0  ;;  %v2110_v9 = vpop.f32.mrf.mxu1 }
 0x758   : > { %v2129_v0 = vand.u32 2147483647, %v4221_v8  ;;  %v2131_v29 = vand.u32 2147483647, %v4224_v45  ;;  %v4233_v16 = vmul.f32 0.70710677, %v4226_v2 }
 0x759   : > { %v2070_v17 = vpop.f32.mrf.mxu0  ;;  %v2111_v19 = vpop.f32.mrf.mxu1  ;;  %v4237_v20 = vmul.f32 0.70710677, %v4228_v37  ;;  %vm2121_vm6 = vcmp.lt.f32.partialorder %v4221_v8, 0.0  ;;  %vm2123_vm7 = vcmp.lt.f32.partialorder %v4224_v45, 0.0 }
 0x75a   : > { %v2133_v22 = vmul.f32 0.3275911, %v2129_v0  ;;  %v2135_v11 = vmul.f32 0.3275911, %v2131_v29  ;;  %v2130_v61 = vand.u32 2147483647, %v4233_v16 }
 0x75b   : > { %v2132_v26 = vand.u32 2147483647, %v4237_v20  ;;  %v2185_v1 = vsub.f32 0.0, %v2129_v0  ;;  %v2187_v32 = vsub.f32 0.0, %v2131_v29  ;;  %vm2122_vm8 = vcmp.lt.f32.partialorder %v4233_v16, 0.0 }
 0x75c   : > { %v2137_v57 = vadd.f32 1.0, %v2133_v22  ;;  %v2139_v27 = vadd.f32 1.0, %v2135_v11  ;;  %v2134_v25 = vmul.f32 0.3275911, %v2130_v61  ;;  %v2186_v35 = vsub.f32 0.0, %v2130_v61 }
 0x75d   : > { %v2136_v18 = vmul.f32 0.3275911, %v2132_v26  ;;  %v2189_v34 = vmul.f32 %v2185_v1, %v2129_v0  ;;  %v2191_v36 = vmul.f32 %v2187_v32, %v2131_v29  ;;  %v2188_v39 = vsub.f32 0.0, %v2132_v26 }
 0x75e   : > { %3340 = vrcp.f32 %v2137_v57  ;;  %v2138_v23 = vadd.f32 1.0, %v2134_v25  ;;  %v2190_v44 = vmul.f32 %v2186_v35, %v2130_v61  ;;  %vm2124_vm9 = vcmp.lt.f32.partialorder %v4237_v20, 0.0 }
 0x75f   : > { %3342 = vrcp.f32 %v2139_v27  ;;  %v2140_v28 = vadd.f32 1.0, %v2136_v18  ;;  %v2193_v42 = vmul.f32 1.442695, %v2189_v34  ;;  %v2197_v48 = vmul.f32 1.442695, %v2191_v36 }
 0x760   : > { %3344 = vrcp.f32 %v2138_v23  ;;  %v2192_v53 = vmul.f32 %v2188_v39, %v2132_v26  ;;  %v2195_v14 = vmul.f32 1.442695, %v2190_v44  ;;  %v3610_v36 = vmov 1.0  }
 0x761   : > { %3346 = vrcp.f32 %v2140_v28  ;;  %v2125_v39 = vsel %vm2121_vm6, -1.0, %v3610_v36  ;;  %v2127_v44 = vsel %vm2123_vm7, -1.0, %v3610_v36 }
 0x762   : > { %3348 = vpow2.f32 %v2193_v42  ;;  %v2199_v30 = vmul.f32 1.442695, %v2192_v53  ;;  %v2126_v53 = vsel %vm2122_vm8, -1.0, %v3610_v36 }
 0x763   : > { %3350 = vpow2.f32 %v2197_v48 }
 0x764   : > { %3352 = vpow2.f32 %v2195_v14 }
 0x765   : > { %3354 = vpow2.f32 %v2199_v30  ;;  %v2116_v30 = vmul.f32 0.5, %v4228_v37 }
 0x76b   : > { %v3341_v33 = vpop.eup %3340 }
 0x76c   : > { %v3343_v40 = vpop.eup %3342  ;;  %v2149_v41 = vmul.f32 1.0614054, %v3341_v33 }
 0x76d   : > { %v2151_v47 = vmul.f32 1.0614054, %v3343_v40  ;;  %v3345_v51 = vpop.eup %3344 }
 0x76e   : > { %v2153_v3 = vadd.f32 -1.4531521, %v2149_v41  ;;  %v2150_v4 = vmul.f32 1.0614054, %v3345_v51  ;;  %v3347_v49 = vpop.eup %3346 }
 0x76f   : > { %v2155_v52 = vadd.f32 -1.4531521, %v2151_v47  ;;  %v2152_v50 = vmul.f32 1.0614054, %v3347_v49  ;;  %v3349_v57 = vpop.eup %3348 }
 0x770   : > { %v2157_v62 = vmul.f32 %v3341_v33, %v2153_v3  ;;  %v2154_v56 = vadd.f32 -1.4531521, %v2150_v4  ;;  %v3351_v23 = vpop.eup %3350 }
 0x771   : > { %v2159_v38 = vmul.f32 %v3343_v40, %v2155_v52  ;;  %v2156_v59 = vadd.f32 -1.4531521, %v2152_v50  ;;  %v3353_v35 = vpop.eup %3352 }
 0x772   : > { %v2161_v55 = vadd.f32 1.4214138, %v2157_v62  ;;  %v2158_v24 = vmul.f32 %v3345_v51, %v2154_v56  ;;  %v3355_v8 = vpop.eup %3354  ;;  %v2113_v62 = vmul.f32 0.5, %v4216_v6 }
 0x773   : > { %v2163_v58 = vadd.f32 1.4214138, %v2159_v38  ;;  %v2160_v10 = vmul.f32 %v3347_v49, %v2156_v59  ;;  %v2114_v38 = vmul.f32 0.5, %v4226_v2 }
 0x774   : > { %v2165_v43 = vmul.f32 %v3341_v33, %v2161_v55  ;;  %v2162_v21 = vadd.f32 1.4214138, %v2158_v24  ;;  %v2128_v55 = vsel %vm2124_vm9, -1.0, %v3610_v36 }
 0x775   : > { %v2167_v5 = vmul.f32 %v3343_v40, %v2163_v58  ;;  %v2164_v0 = vadd.f32 1.4214138, %v2160_v10 }
 0x776   : > { %v2169_v60 = vadd.f32 -0.28449672, %v2165_v43  ;;  %v2166_v15 = vmul.f32 %v3345_v51, %v2162_v21 }
 0x777   : > { %v2171_v46 = vadd.f32 -0.28449672, %v2167_v5  ;;  %v2168_v22 = vmul.f32 %v3347_v49, %v2164_v0 }
 0x778   : > { %v2173_v31 = vmul.f32 %v3341_v33, %v2169_v60  ;;  %v2170_v17 = vadd.f32 -0.28449672, %v2166_v15 }
 0x779   : > { %v2175_v9 = vmul.f32 %v3343_v40, %v2171_v46  ;;  %v2172_v25 = vadd.f32 -0.28449672, %v2168_v22 }
 0x77a   : > { %v2177_v29 = vadd.f32 0.2548296, %v2173_v31  ;;  %v2174_v61 = vmul.f32 %v3345_v51, %v2170_v17 }
 0x77b   : > { %v2179_v19 = vadd.f32 0.2548296, %v2175_v9  ;;  %v2176_v1 = vmul.f32 %v3347_v49, %v2172_v25 }
 0x77c   : > { %v2181_v11 = vmul.f32 %v3341_v33, %v2177_v29  ;;  %v2178_v18 = vadd.f32 0.2548296, %v2174_v61  ;;  %v2862_v29 = vld [vmem:[%s4327_s14] ss:$0 sm:$0xff] }
 0x77d   : > { %v2183_v27 = vmul.f32 %v3343_v40, %v2179_v19  ;;  %v2180_v33 = vadd.f32 0.2548296, %v2176_v1 }
 0x77e   : > { %v2201_v26 = vmul.f32 %v3349_v57, %v2181_v11  ;;  %v2182_v34 = vmul.f32 %v3345_v51, %v2178_v18 }
 0x77f   : > { %v2203_v28 = vmul.f32 %v3351_v23, %v2183_v27  ;;  %v2184_v47 = vmul.f32 %v3347_v49, %v2180_v33  ;;  %v2115_v49 = vmul.f32 0.5, %v4218_v13  ;;  %v2829_v13 = vld [vmem:[%s4326_s13] ss:$0 sm:$0xff] }
 0x780   : > { %v2205_v32 = vsub.f32 1.0, %v2201_v26  ;;  %v2202_v40 = vmul.f32 %v3353_v35, %v2182_v34 }
 0x781   : > { %v2207_v41 = vsub.f32 1.0, %v2203_v28  ;;  %v2204_v45 = vmul.f32 %v3355_v8, %v2184_v47 }
 0x782   : > { %v2209_v42 = vmul.f32 %v2205_v32, %v2125_v39  ;;  %v2206_v3 = vsub.f32 1.0, %v2202_v40 }
 0x783   : > { %v2211_v48 = vmul.f32 %v2207_v41, %v2127_v44  ;;  %v2208_v4 = vsub.f32 1.0, %v2204_v45 }
 0x784   : > { %v2213_v52 = vadd.f32 1.0, %v2209_v42  ;;  %v2210_v51 = vmul.f32 %v2206_v3, %v2126_v53 }
 0x785   : > { %v2215_v14 = vadd.f32 1.0, %v2211_v48  ;;  %v2212_v58 = vmul.f32 %v2208_v4, %v2128_v55 }
 0x786   : > { %v2214_v16 = vadd.f32 1.0, %v2210_v51  ;;  %v2217_v56 = vmul.f32 %v2213_v52, %v2113_v62 }
 0x787   : > { %v2216_v43 = vadd.f32 1.0, %v2212_v58  ;;  %v2219_v24 = vmul.f32 %v2215_v14, %v2115_v49 }
 0x788   : > { %v2218_v50 = vmul.f32 %v2214_v16, %v2114_v38  ;;  %v2222_v5 = vpack.c.bf16 %v2217_v56, %v2217_v56 }
 0x789   : > { %v2220_v59 = vmul.f32 %v2216_v43, %v2116_v30  ;;  %v2224_v60 = vpack.c.bf16 %v2219_v24, %v2219_v24 }
 0x78a   : > { %v2223_v20 = vpack.c.bf16 %v2218_v50, %v2218_v50 }
 0x78b   : > { %v2225_v6 = vpack.c.bf16 %v2220_v59, %v2220_v59 }
 0x78c   : > { %2521 = vmatprep.mubr.bf16.mxu0 %v2223_v20 }
 0x78d   : > { %2522 = vmatmul.mubr.bf16.vlgmr.msra.gmra.mxu0 %v2222_v5  ;;  %2561 = vmatprep.mubr.bf16.mxu1 %v2225_v6 }
 0x78e   : > { %2562 = vmatmul.mubr.bf16.vlgmr.msra.gmra.mxu1 %v2224_v60 }
 0x84d   : > { %v2939_v2 = vpop.f32.mrf.mxu0 }
 0x84e   : > { %v2961_v37 = vpop.f32.mrf.mxu1 }
 0x84f   : > { %v2940_v21 = vpop.f32.mrf.mxu0 }
 0x850   : > { %v2941_v46 = vadd.f32 %v2940_v21, %v2939_v2  ;;  %v2962_v15 = vpop.f32.mrf.mxu1 }
 0x851   : > { %v2942_v10 = vpop.f32.mrf.mxu0  ;;  %v2963_v9 = vadd.f32 %v2962_v15, %v2961_v37 }
 0x852   : > { %v2524_v31 = vadd.f32 %v2941_v46, %v2829_v13  ;;  %v2964_v17 = vpop.f32.mrf.mxu1 }
 0x853   : > { %v2943_v0 = vpop.f32.mrf.mxu0 }
 0x854   : > { %v2564_v19 = vadd.f32 %v2963_v9, %v2524_v31  ;;  %v2965_v22 = vpop.f32.mrf.mxu1 }
 0x856   : > { %v2575_v11 = vmul.f32 %v2862_v29, %v2564_v19 }
 0x858   : > { %v2577_v61 = vrot.slane %v2575_v11, 1  ;;  %v2578_v57 = vrot.slane %v2575_v11, 2  ;;  %v2579_v27 = vrot.slane %v2575_v11, 3  ;;  %v2584_v25 = vadd.f32 %v2575_v11, %v4190_v7 }
 0x85a   : > { %v2585_v23 = vadd.f32 %v2577_v61, %v4192_v12  ;;  %v2586_v26 = vadd.f32 %v2578_v57, %v4194_v54  ;;  %v2587_v18 = vadd.f32 %v2579_v27, %v4196_v63  ;;  %2588 = vst [vmem:[%s3976_s22] sm:$0x1] %v2584_v25 }
 0x85c   : > { %2589 = vst [vmem:[%s3976_s22 + $0x10] sm:$0x1] %v2585_v23  ;;  %2590 = vst [vmem:[%s3976_s22 + $0x20] sm:$0x1] %v2586_v26 }
 0x85d   : > { %2591 = vst [vmem:[%s3976_s22 + $0x30] sm:$0x1] %v2587_v18 }
 0x85e   : > { %3529 = shalt.err (!%p3526_p7)
}
 0x85f   : > { %s3530_s20 = scalar_lea.hbm %s4260_s19, 1024  ;;  %s3534_s27 = scalar_lea.hbm %s4367_s23, 2048 }
 0x860   : > { %p3531_p8 = scmp.ne.s32.totalorder %s4260_s19, %s3530_s20  ;;  %p3535_p10 = scmp.lt.s32.totalorder %s4260_s19, %s4367_s23 }
 0x861   : > { %p3536_p3 = scmp.lt.s32.totalorder %s3534_s27, %s3530_s20 }
 0x862   : > { %p3532_p11 = pnand %p3531_p8, %p3742_p5 }
 0x863   : > { %p3537_p0 = por %p3536_p3, %p3535_p10 }
 0x864   : > { %p3533_p12 = pneg %p3532_p11 }
 0x866   : > { %p3538_p1 = pnand %p3537_p0, %p3533_p12 }
 0x868   : > { %3541 = shalt.err (!%p3538_p1)
}
 0x869   : > { %s3612_s0 = smov 128   ;;  %s3613_s21 = smov 8  }
 0x86a   : > { %3089 = dma.vmem_to_hbm [thread:$0]  (%p3742_p5), %s4262_s18, 1024, %s4260_s19, %s4273_s28, %s3612_s0, %s3612_s0, %s3613_s21  }
 0x86b PF: > { %s4368_s29 = sld [smem:[#allocation21_spill]] }
 0x86c   : > { %s4369_s17 = sld [smem:[#allocation19_spill]] }
 0x86d   : > { %s4370_s22 = sld [smem:[#allocation24_spill]] }
 0x871   : > { %p3126_p2 = scmp.ge.s32.totalorder %s4368_s29, 2 }
 0x872   : > { %s2622_s24 = sand.u32 1, %s4369_s17  }
 0x873   : > { %p4371_p4 = scmp.ne.s32.totalorder %s4370_s22, 0  ;;  %s2623_s20 = scalar_lea.sflag [#allocation4], %s2622_s24 }
 0x875   : > { %p3111_p6 = pnand %p3126_p2, %p4371_p4 }
 0x877   : > { %p3112_p13 = pneg %p3111_p6 }
 0x879   : > { %3575 = dma.done.wait (%p3112_p13), %s2623_s20, 1024  }
 0x87a   : > { %3577 = vsyncadd (%p3112_p13), %s2623_s20, 4294966272  ;;  %s4372_s27 = sld [smem:[#allocation22_spill]]  ;;  %s4375_s24 = smov %s3584_s25 }
 0x87b   : > { %s4373_s26 = sld [smem:[#allocation20_spill]] }
 0x87c   : > { %s4374_s30 = sld [smem:[#allocation23_spill]] }
 0x880   : > { %p31_p9 = scmp.ge.s32.totalorder %s4372_s27, 4  }
 0x881   : > { %s4376_s25 = smov %s4373_s26 }
 0x882   : > { %s4377_s26 = smov %s4374_s30  ;;  %33 = sbr.rel (!%p31_p9) target bundleno = 11 (0xb), region = 148 }
 0x887   :  { %2628 = vsyncpa [#allocation3], 1 }
 0x888   :  { %2630 = vsyncpa [#allocation3 + $0x1], 1 }
 0x889   :  { %2631 = vsyncpa [#allocation6], 1 }
 0x88a   :  { %2632 = vsyncpa [#allocation9], 1 }
 0x88b   :  { %2633 = vsyncpa [#allocation12], 1 }
 0x88c   :  { %2634 = vsyncpa [#allocation4], 1 }
 0x88d   :  { %2636 = vsyncpa [#allocation4 + $0x1], 1 }

</bundles_post_ra>
